<compile_context>
chip_gen: v5e
topology: v5e:2x2
jax: 0.10.0
libtpu: 0.0.40
codegen_flags: <defaults>
</compile_context>

<pallas_src>
import numpy as np
import jax
import jax.numpy as jnp
from jax.experimental import pallas as pl
from jax.experimental.pallas import tpu as pltpu


# ----------------------------------------------------------------------------
# Host-side parameter -> matrix construction (tiny shapes, float32)
# ----------------------------------------------------------------------------
def _bilinear_matrix(out_size, in_size):
    """Row-interpolation matrix for torch Upsample(mode='bilinear', align_corners=True)."""
    A = np.zeros((out_size, in_size), dtype=np.float32)
    if out_size == 1:
        A[0, 0] = 1.0
        return A
    scale = (in_size - 1) / (out_size - 1)
    for j in range(out_size):
        src = j * scale
        i0 = min(int(np.floor(src)), in_size - 1)
        i1 = min(i0 + 1, in_size - 1)
        f = src - i0
        A[j, i0] += 1.0 - f
        A[j, i1] += f
    return A


def _conv_band_mats(w, Wt):
    """w: (Co, Ci, kh, kw) torch conv weight.  Returns (kh, Wt*Ci, Wt*Co) block-banded
    matrices with PyTorch padding='same' column clipping baked in
    (pad_left = (kw-1)//2, remainder on the right)."""
    w = np.asarray(w, dtype=np.float32)
    Co, Ci, kh, kw = w.shape
    pad_left = (kw - 1) // 2
    mats = np.zeros((kh, Wt * Ci, Wt * Co), dtype=np.float32)
    for ky in range(kh):
        for xo in range(Wt):
            for kx in range(kw):
                xi = xo + kx - pad_left
                if 0 <= xi < Wt:
                    mats[ky, xi * Ci:(xi + 1) * Ci, xo * Co:(xo + 1) * Co] = w[:, :, ky, kx].T
    return mats


def _pick_group(n, he, row_target=128, row_cap=512, min_steps=2):
    """Images per grid step.  G images are folded into the matmul row dimension:
    prefer G*He >= row_target (fill the MXU rows), but keep at least `min_steps`
    grid steps so the single 'parallel' axis can split across TensorCores
    (v7x has 2 TCs), and cap the per-step row tile."""
    best = 1
    for g in range(1, n + 1):
        if n % g:
            continue
        if n // g < min(min_steps, n):
            break
        if g * he > row_cap:
            break
        best = g
        if g * he >= row_target:
            break
    return best


# ----------------------------------------------------------------------------
# Pallas kernel (one group of G images per grid step, rows = g*He + y)
# ----------------------------------------------------------------------------
def _make_kernel(G, Hx, He, Kx, Ka, Ke):
    f32, bf16 = jnp.float32, jnp.bfloat16
    M = G * He

    def kernel(x_ref, enc_ref, ahg_ref, mw1_ref, w2a_ref, w2e_ref, w3_ref,
               b1_ref, b2_ref, b3_ref, bns_ref, bnb_ref,
               out_ref, s_t, s_a, s_b, s_e):
        # Zero ONLY the per-group H-pad border rows (interiors are always fully
        # overwritten).  Re-done every step so the kernel stays correct when
        # the 'parallel' grid axis is split across TensorCores.
        z_a = jnp.zeros((G, 1, Ka), bf16)
        z_e = jnp.zeros((G, 1, Ke), bf16)
        s_t[:, He:He + 1, :] = jnp.zeros((G, 1, Kx), bf16)
        s_a[:, 0:1, :] = z_a
        s_a[:, He + 1:He + 2, :] = z_a
        s_b[:, 0:1, :] = z_a
        s_b[:, He + 1:He + 2, :] = z_a
        s_e[:, 0:1, :] = z_e
        s_e[:, He + 1:He + 2, :] = z_e

        # enc slab: H-pad it in VMEM (bf16, no f32 round-trip, no host-side pad)
        enc_bf = enc_ref[0]                                   # (G, He, Ke) bf16
        s_e[:, 1:He + 1, :] = enc_bf
        enc2d = enc_bf.reshape(M, Ke)

        # ---- bilinear upsample rows: t = blockdiag_G(Ah) @ x (align_corners=True).
        #      The W-direction column mix is folded into the conv1 bands (MwW1).
        x2d = x_ref[0].reshape(G * Hx, Kx)                    # (G*Hx, Kx) bf16
        t = jnp.dot(ahg_ref[...], x2d, preferred_element_type=f32)   # (M, Kx) f32
        t_bf = t.astype(bf16)
        s_t[:, 0:He, :] = t_bf.reshape(G, He, Kx)             # bottom pad row stays zero

        # ---- conv1: 2x2 'same' (torch even kernel: pad bottom/right), W-upsample fused
        a = (jnp.dot(t_bf, mw1_ref[0], preferred_element_type=f32)
             + jnp.dot(s_t[:, 1:He + 1, :].reshape(M, Kx), mw1_ref[1],
                       preferred_element_type=f32)
             + b1_ref[...])                                   # (M, Ka) f32
        a_bf = a.astype(bf16)
        s_a[:, 1:He + 1, :] = a_bf.reshape(G, He, Ka)         # rows 0, He+1 are zero pad

        # ---- conv2 on cat([a, enc], C) = conv2_a(a) + conv2_e(enc); bias; ReLU
        acc2 = jnp.dot(a_bf, w2a_ref[1], preferred_element_type=f32)
        acc2 = acc2 + jnp.dot(enc2d, w2e_ref[1], preferred_element_type=f32)
        for ky in (0, 2):
            acc2 = acc2 + jnp.dot(s_a[:, ky:ky + He, :].reshape(M, Ka), w2a_ref[ky],
                                  preferred_element_type=f32)
            acc2 = acc2 + jnp.dot(s_e[:, ky:ky + He, :].reshape(M, Ke), w2e_ref[ky],
                                  preferred_element_type=f32)
        b = jnp.maximum(acc2 + b2_ref[...], 0.0)
        b_bf = b.astype(bf16)
        s_b[:, 1:He + 1, :] = b_bf.reshape(G, He, Ka)

        # ---- conv3: 3x3 'same'; bias; ReLU
        acc3 = jnp.dot(b_bf, w3_ref[1], preferred_element_type=f32)
        for ky in (0, 2):
            acc3 = acc3 + jnp.dot(s_b[:, ky:ky + He, :].reshape(M, Ka), w3_ref[ky],
                                  preferred_element_type=f32)
        c = jnp.maximum(acc3 + b3_ref[...], 0.0)

        # ---- dropout (eval: identity) + BatchNorm2d (eval-mode per-channel affine)
        out_ref[0] = (c * bns_ref[...] + bnb_ref[...]).reshape(G, He, Ka)

    return kernel


# ----------------------------------------------------------------------------
# Wrapper (NCHW in / NCHW out, matching the PyTorch module interface)
# ----------------------------------------------------------------------------
def decoder_block_forward(x_nchw, enc_nchw, params):
    N, Cin, Hx, Wx = x_nchw.shape
    Ne, Cenc, He, We = enc_nchw.shape
    assert Ne == N
    Cout = params["conv1_w"].shape[0]
    assert Cout + Cenc == Cin, "cat([conv1(x), enc]) must have in_channels channels"

    f32, bf16 = jnp.float32, jnp.bfloat16

    G = _pick_group(N, He)                      # images folded into the row dimension
    NG = N // G
    Kx, Ka, Ke = Wx * Cin, We * Cout, We * Cenc
    M = G * He

    # NCHW -> channels-minor slabs, G images per grid step along a group axis.
    def pack(t):
        n, c, h, w = t.shape
        return jnp.transpose(t, (0, 2, 3, 1)).reshape(NG, G, h, w * c)

    x4 = pack(x_nchw.astype(bf16))              # (NG, G, Hx, Kx)
    enc4 = pack(enc_nchw.astype(bf16))          # (NG, G, He, Ke)

    # Upsample matrices: rows via blockdiag_G(Ah) (tiny); the column mix
    # Mw = kron(Aw^T, I_Cin) is fused into the conv1 bands -> never in VMEM.
    Ah = _bilinear_matrix(He, Hx)                                         # (He, Hx)
    AhG = jnp.asarray(np.kron(np.eye(G, dtype=np.float32), Ah), bf16)     # (M, G*Hx)
    Aw = _bilinear_matrix(We, Wx)
    Mw = np.kron(Aw.T, np.eye(Cin, dtype=np.float32))                     # (Kx, We*Cin)
    W1b = _conv_band_mats(params["conv1_w"], We)                          # (2, We*Cin, Ka)
    MwW1 = jnp.asarray(np.stack([Mw @ W1b[k] for k in range(2)]), bf16)   # (2, Kx, Ka)
    w2 = np.asarray(params["conv2_w"], np.float32)
    W2a = jnp.asarray(_conv_band_mats(w2[:, :Cout], We), bf16)            # (3, Ka, Ka)
    W2e = jnp.asarray(_conv_band_mats(w2[:, Cout:], We), bf16)            # (3, Ke, Ka)
    W3 = jnp.asarray(_conv_band_mats(params["conv3_w"], We), bf16)        # (3, Ka, Ka)

    def tile_row(v):
        return jnp.tile(jnp.asarray(v, f32), We).reshape(1, Ka)

    b1r = tile_row(params["conv1_b"])
    b2r = tile_row(params["conv2_b"])
    b3r = tile_row(params["conv3_b"])
    eps = 1e-5
    bn_scale = params["bn_gamma"] / jnp.sqrt(params["bn_var"] + eps)
    bn_shift = params["bn_beta"] - params["bn_mean"] * bn_scale
    bnsr = tile_row(bn_scale)
    bnbr = tile_row(bn_shift)

    kern = _make_kernel(G, Hx, He, Kx, Ka, Ke)
    consts = (AhG, MwW1, W2a, W2e, W3, b1r, b2r, b3r, bnsr, bnbr)

    # VMEM budget: constants single-buffered (Buffered(1)), activation blocks
    # double-buffered, bf16 scratch, plus compiler headroom; capped at 48 MiB
    # so it stays safely under v7x's 64 MiB physical VMEM.
    weight_bytes = sum(int(a.size) * a.dtype.itemsize for a in consts)
    block_bytes = (G * Hx * Kx + G * He * Ke) * 2 + G * He * Ka * 4
    scratch_bytes = (G * (He + 1) * Kx + 2 * G * (He + 2) * Ka + G * (He + 2) * Ke) * 2
    vmem_limit = int(min(48 << 20,
                         max(16 << 20,
                             weight_bytes + 2 * block_bytes + scratch_bytes + (4 << 20))))

    def build(single_buffer_consts):
        def const(a):
            shape = a.shape
            if single_buffer_consts:
                return pl.BlockSpec(shape, lambda n: (0,) * len(shape),
                                    pipeline_mode=pl.Buffered(1))
            return pl.BlockSpec(shape, lambda n: (0,) * len(shape))

        return pl.pallas_call(
            kern,
            out_shape=jax.ShapeDtypeStruct((NG, G, He, Ka), f32),
            grid_spec=pltpu.PrefetchScalarGridSpec(
                num_scalar_prefetch=0,
                grid=(NG,),
                in_specs=[
                    pl.BlockSpec((1, G, Hx, Kx), lambda n: (n, 0, 0, 0)),   # x slab
                    pl.BlockSpec((1, G, He, Ke), lambda n: (n, 0, 0, 0)),   # enc slab
                ] + [const(a) for a in consts],
                out_specs=pl.BlockSpec((1, G, He, Ka), lambda n: (n, 0, 0, 0)),
                scratch_shapes=[
                    pltpu.VMEM((G, He + 1, Kx), bf16),   # row-upsampled x + bottom pad
                    pltpu.VMEM((G, He + 2, Ka), bf16),   # conv1 out, H-padded
                    pltpu.VMEM((G, He + 2, Ka), bf16),   # relu(conv2) out, H-padded
                    pltpu.VMEM((G, He + 2, Ke), bf16),   # enc, H-padded
                ],
            ),
            compiler_params=pltpu.CompilerParams(
                dimension_semantics=("parallel",),       # 2 TCs on v7x; harmless elsewhere
                vmem_limit_bytes=vmem_limit),
        )

    args = (x4, enc4) + consts
    try:
        out4 = build(True)(*args)        # grid-invariant operands single-buffered
    except Exception:
        # Fallback if this JAX build rejects pipeline_mode on top-level specs;
        # only costs double-buffered constants.
        out4 = build(False)(*args)

    # (NG, G, He, We*Cout) -> NCHW
    out = out4.reshape(N, He, We, Cout)
    return jnp.transpose(out, (0, 3, 1, 2))


# ----------------------------------------------------------------------------
# Pure-JAX f32 reference (eval-mode), for a loose numerical sanity check
# ----------------------------------------------------------------------------
def _reference_forward(x, enc, params):
    _, _, Hx, Wx = x.shape
    _, _, He, We = enc.shape
    hp = jax.lax.Precision.HIGHEST
    Ah = jnp.asarray(_bilinear_matrix(He, Hx))
    Aw = jnp.asarray(_bilinear_matrix(We, Wx))
    up = jnp.einsum('ph,nchw->ncpw', Ah, x, precision=hp)
    up = jnp.einsum('qw,ncpw->ncpq', Aw, up, precision=hp)

    def conv(v, w, b, pad):
        o = jax.lax.conv_general_dilated(
            v, jnp.asarray(w, jnp.float32), (1, 1), pad,
            dimension_numbers=('NCHW', 'OIHW', 'NCHW'), precision=hp)
        return o + jnp.asarray(b, jnp.float32).reshape(1, -1, 1, 1)

    a = conv(up, params["conv1_w"], params["conv1_b"], [(0, 1), (0, 1)])
    z = jnp.concatenate([a, enc], axis=1)
    z = jnp.maximum(conv(z, params["conv2_w"], params["conv2_b"], [(1, 1), (1, 1)]), 0.0)
    z = jnp.maximum(conv(z, params["conv3_w"], params["conv3_b"], [(1, 1), (1, 1)]), 0.0)
    eps = 1e-5
    scale = params["bn_gamma"] / jnp.sqrt(params["bn_var"] + eps)
    shift = params["bn_beta"] - params["bn_mean"] * scale
    return z * scale.reshape(1, -1, 1, 1) + shift.reshape(1, -1, 1, 1)


# ----------------------------------------------------------------------------
if __name__ == "__main__":
    key = jax.random.PRNGKey(0)
    N, Cin, Cout = 2, 8, 4        # DecoderBlock(in_channels=8, out_channels=4)
    Cenc = Cin - Cout             # enc channels so cat gives in_channels
    Hx = Wx = 8                   # low-res decoder input
    He = We = 16                  # encoder skip resolution (upsample target)

    ks = jax.random.split(key, 10)
    x = jax.random.normal(ks[0], (N, Cin, Hx, Wx), jnp.float32)
    enc = jax.random.normal(ks[1], (N, Cenc, He, We), jnp.float32)

    params = {
        "conv1_w": 0.2 * jax.random.normal(ks[2], (Cout, Cin, 2, 2), jnp.float32),
        "conv1_b": 0.1 * jax.random.normal(ks[3], (Cout,), jnp.float32),
        "conv2_w": 0.2 * jax.random.normal(ks[4], (Cout, Cin, 3, 3), jnp.float32),
        "conv2_b": 0.1 * jax.random.normal(ks[5], (Cout,), jnp.float32),
        "conv3_w": 0.2 * jax.random.normal(ks[6], (Cout, Cout, 3, 3), jnp.float32),
        "conv3_b": 0.1 * jax.random.normal(ks[7], (Cout,), jnp.float32),
        "bn_gamma": 1.0 + 0.1 * jax.random.normal(ks[8], (Cout,), jnp.float32),
        "bn_beta": 0.1 * jax.random.normal(ks[9], (Cout,), jnp.float32),
        "bn_mean": jnp.zeros((Cout,), jnp.float32),   # BatchNorm2d default running stats
        "bn_var": jnp.ones((Cout,), jnp.float32),
    }

    out = decoder_block_forward(x, enc, params)
    out = jax.block_until_ready(out)
    assert out.shape == (N, Cout, He, We), out.shape
    assert bool(jnp.all(jnp.isfinite(out)))

    # loose check vs. f32 reference (kernel uses bf16 matmul operands)
    ref = _reference_forward(x, enc, params)
    err = float(jnp.max(jnp.abs(out - ref)))
    tol = 5e-2 * float(jnp.max(jnp.abs(ref))) + 5e-2
    assert err <= tol, f"kernel vs reference mismatch: max abs err {err:.4f} > tol {tol:.4f}"

    print("KERNEL_OK")
</pallas_src>

<mosaic_0001>
module attributes {stable_mosaic.version = 11 : i64} {
  func.func @kernel(%arg0: i32, %arg1: memref<1x1x8x64xbf16, #tpu.memory_space<vmem>>, %arg2: memref<1x1x16x64xbf16, #tpu.memory_space<vmem>>, %arg3: memref<16x8xbf16, #tpu.memory_space<vmem>>, %arg4: memref<2x64x64xbf16, #tpu.memory_space<vmem>>, %arg5: memref<3x64x64xbf16, #tpu.memory_space<vmem>>, %arg6: memref<3x64x64xbf16, #tpu.memory_space<vmem>>, %arg7: memref<3x64x64xbf16, #tpu.memory_space<vmem>>, %arg8: memref<1x64xf32, #tpu.memory_space<vmem>>, %arg9: memref<1x64xf32, #tpu.memory_space<vmem>>, %arg10: memref<1x64xf32, #tpu.memory_space<vmem>>, %arg11: memref<1x64xf32, #tpu.memory_space<vmem>>, %arg12: memref<1x64xf32, #tpu.memory_space<vmem>>, %arg13: memref<1x1x16x64xf32, #tpu.memory_space<vmem>>, %arg14: memref<1x17x64xbf16, #tpu.memory_space<vmem>>, %arg15: memref<1x18x64xbf16, #tpu.memory_space<vmem>>, %arg16: memref<1x18x64xbf16, #tpu.memory_space<vmem>>, %arg17: memref<1x18x64xbf16, #tpu.memory_space<vmem>>) attributes {dimension_semantics = [#tpu.dimension_semantics<parallel>], iteration_bounds = array<i64: 2>, scalar_prefetch = 0 : i64, scratch_operands = 4 : i64, tpu.core_type = #tpu.core_type<tc>, window_params = [{transform_indices = @transform_0, window_bounds = array<i64: 1, 1, 8, 64>}, {transform_indices = @transform_1, window_bounds = array<i64: 1, 1, 16, 64>}, {pipeline_mode = #tpu.pipeline_mode<synchronous>, transform_indices = @transform_2, window_bounds = array<i64: 16, 8>}, {pipeline_mode = #tpu.pipeline_mode<synchronous>, transform_indices = @transform_3, window_bounds = array<i64: 2, 64, 64>}, {pipeline_mode = #tpu.pipeline_mode<synchronous>, transform_indices = @transform_4, window_bounds = array<i64: 3, 64, 64>}, {pipeline_mode = #tpu.pipeline_mode<synchronous>, transform_indices = @transform_5, window_bounds = array<i64: 3, 64, 64>}, {pipeline_mode = #tpu.pipeline_mode<synchronous>, transform_indices = @transform_6, window_bounds = array<i64: 3, 64, 64>}, {pipeline_mode = #tpu.pipeline_mode<synchronous>, transform_indices = @transform_7, window_bounds = array<i64: 1, 64>}, {pipeline_mode = #tpu.pipeline_mode<synchronous>, transform_indices = @transform_8, window_bounds = array<i64: 1, 64>}, {pipeline_mode = #tpu.pipeline_mode<synchronous>, transform_indices = @transform_9, window_bounds = array<i64: 1, 64>}, {pipeline_mode = #tpu.pipeline_mode<synchronous>, transform_indices = @transform_10, window_bounds = array<i64: 1, 64>}, {pipeline_mode = #tpu.pipeline_mode<synchronous>, transform_indices = @transform_11, window_bounds = array<i64: 1, 64>}, {transform_indices = @transform_12, window_bounds = array<i64: 1, 1, 16, 64>}]} {
    %cst = arith.constant 0.000000e+00 : bf16
    %0 = vector.broadcast %cst : bf16 to vector<1x1x64xbf16>
    %cst_0 = arith.constant 0.000000e+00 : bf16
    %1 = vector.broadcast %cst_0 : bf16 to vector<1x1x64xbf16>
    %cst_1 = arith.constant 0.000000e+00 : bf16
    %2 = vector.broadcast %cst_1 : bf16 to vector<1x1x64xbf16>
    %c0 = arith.constant 0 : index
    %c16 = arith.constant 16 : index
    %c0_2 = arith.constant 0 : index
    %3 = vector.load %arg14[%c0, %c16, %c0_2] : memref<1x17x64xbf16, #tpu.memory_space<vmem>>, vector<1x1x64xbf16>
    tpu.vector_store %arg14[%c0, %c16, %c0_2], %2 {strides = array<i32>} : memref<1x17x64xbf16, #tpu.memory_space<vmem>>, vector<1x1x64xbf16>,
    %c0_3 = arith.constant 0 : index
    %c0_4 = arith.constant 0 : index
    %c0_5 = arith.constant 0 : index
    %4 = vector.load %arg15[%c0_3, %c0_4, %c0_5] : memref<1x18x64xbf16, #tpu.memory_space<vmem>>, vector<1x1x64xbf16>
    tpu.vector_store %arg15[%c0_3, %c0_4, %c0_5], %0 {strides = array<i32>} : memref<1x18x64xbf16, #tpu.memory_space<vmem>>, vector<1x1x64xbf16>,
    %c0_6 = arith.constant 0 : index
    %c17 = arith.constant 17 : index
    %c0_7 = arith.constant 0 : index
    %5 = vector.load %arg15[%c0_6, %c17, %c0_7] : memref<1x18x64xbf16, #tpu.memory_space<vmem>>, vector<1x1x64xbf16>
    tpu.vector_store %arg15[%c0_6, %c17, %c0_7], %0 {strides = array<i32>} : memref<1x18x64xbf16, #tpu.memory_space<vmem>>, vector<1x1x64xbf16>,
    %c0_8 = arith.constant 0 : index
    %c0_9 = arith.constant 0 : index
    %c0_10 = arith.constant 0 : index
    %6 = vector.load %arg16[%c0_8, %c0_9, %c0_10] : memref<1x18x64xbf16, #tpu.memory_space<vmem>>, vector<1x1x64xbf16>
    tpu.vector_store %arg16[%c0_8, %c0_9, %c0_10], %0 {strides = array<i32>} : memref<1x18x64xbf16, #tpu.memory_space<vmem>>, vector<1x1x64xbf16>,
    %c0_11 = arith.constant 0 : index
    %c17_12 = arith.constant 17 : index
    %c0_13 = arith.constant 0 : index
    %7 = vector.load %arg16[%c0_11, %c17_12, %c0_13] : memref<1x18x64xbf16, #tpu.memory_space<vmem>>, vector<1x1x64xbf16>
    tpu.vector_store %arg16[%c0_11, %c17_12, %c0_13], %0 {strides = array<i32>} : memref<1x18x64xbf16, #tpu.memory_space<vmem>>, vector<1x1x64xbf16>,
    %c0_14 = arith.constant 0 : index
    %c0_15 = arith.constant 0 : index
    %c0_16 = arith.constant 0 : index
    %8 = vector.load %arg17[%c0_14, %c0_15, %c0_16] : memref<1x18x64xbf16, #tpu.memory_space<vmem>>, vector<1x1x64xbf16>
    tpu.vector_store %arg17[%c0_14, %c0_15, %c0_16], %1 {strides = array<i32>} : memref<1x18x64xbf16, #tpu.memory_space<vmem>>, vector<1x1x64xbf16>,
    %c0_17 = arith.constant 0 : index
    %c17_18 = arith.constant 17 : index
    %c0_19 = arith.constant 0 : index
    %9 = vector.load %arg17[%c0_17, %c17_18, %c0_19] : memref<1x18x64xbf16, #tpu.memory_space<vmem>>, vector<1x1x64xbf16>
    tpu.vector_store %arg17[%c0_17, %c17_18, %c0_19], %1 {strides = array<i32>} : memref<1x18x64xbf16, #tpu.memory_space<vmem>>, vector<1x1x64xbf16>,
    %c0_20 = arith.constant 0 : index
    %c0_21 = arith.constant 0 : index
    %c0_22 = arith.constant 0 : index
    %c0_23 = arith.constant 0 : index
    %10 = vector.load %arg2[%c0_20, %c0_21, %c0_22, %c0_23] : memref<1x1x16x64xbf16, #tpu.memory_space<vmem>>, vector<1x1x16x64xbf16>
    %11 = vector.shape_cast %10 : vector<1x1x16x64xbf16> to vector<1x16x64xbf16>
    %c0_24 = arith.constant 0 : index
    %c1 = arith.constant 1 : index
    %c0_25 = arith.constant 0 : index
    %12 = vector.load %arg17[%c0_24, %c1, %c0_25] : memref<1x18x64xbf16, #tpu.memory_space<vmem>>, vector<1x16x64xbf16>
    tpu.vector_store %arg17[%c0_24, %c1, %c0_25], %11 {strides = array<i32>} : memref<1x18x64xbf16, #tpu.memory_space<vmem>>, vector<1x16x64xbf16>,
    %13 = vector.shape_cast %11 : vector<1x16x64xbf16> to vector<16x64xbf16>
    %c0_26 = arith.constant 0 : index
    %c0_27 = arith.constant 0 : index
    %c0_28 = arith.constant 0 : index
    %c0_29 = arith.constant 0 : index
    %14 = vector.load %arg1[%c0_26, %c0_27, %c0_28, %c0_29] : memref<1x1x8x64xbf16, #tpu.memory_space<vmem>>, vector<1x1x8x64xbf16>
    %15 = vector.shape_cast %14 : vector<1x1x8x64xbf16> to vector<1x8x64xbf16>
    %16 = vector.shape_cast %15 : vector<1x8x64xbf16> to vector<8x64xbf16>
    %c0_30 = arith.constant 0 : index
    %c0_31 = arith.constant 0 : index
    %17 = vector.load %arg3[%c0_30, %c0_31] : memref<16x8xbf16, #tpu.memory_space<vmem>>, vector<16x8xbf16>
    %cst_32 = arith.constant dense<0.000000e+00> : vector<16x64xf32>
    %18 = tpu.matmul %17, %16, %cst_32 {dimension_numbers = #tpu.dot_dimension_numbers<[1], [0], [0], [1], [0, 0, 1, 1], [], []>} : vector<16x8xbf16>, vector<8x64xbf16>, vector<16x64xf32> -> vector<16x64xf32>
    %19 = arith.truncf %18 : vector<16x64xf32> to vector<16x64xbf16>
    %20 = vector.shape_cast %19 : vector<16x64xbf16> to vector<1x16x64xbf16>
    %c0_33 = arith.constant 0 : index
    %c0_34 = arith.constant 0 : index
    %c0_35 = arith.constant 0 : index
    %21 = vector.load %arg14[%c0_33, %c0_34, %c0_35] : memref<1x17x64xbf16, #tpu.memory_space<vmem>>, vector<1x16x64xbf16>
    tpu.vector_store %arg14[%c0_33, %c0_34, %c0_35], %20 {strides = array<i32>} : memref<1x17x64xbf16, #tpu.memory_space<vmem>>, vector<1x16x64xbf16>,
    %c0_36 = arith.constant 0 : index
    %c0_37 = arith.constant 0 : index
    %c0_38 = arith.constant 0 : index
    %22 = vector.load %arg4[%c0_36, %c0_37, %c0_38] : memref<2x64x64xbf16, #tpu.memory_space<vmem>>, vector<1x64x64xbf16>
    %23 = vector.shape_cast %22 : vector<1x64x64xbf16> to vector<64x64xbf16>
    %cst_39 = arith.constant dense<0.000000e+00> : vector<16x64xf32>
    %24 = tpu.matmul %19, %23, %cst_39 {dimension_numbers = #tpu.dot_dimension_numbers<[1], [0], [0], [1], [0, 0, 1, 1], [], []>} : vector<16x64xbf16>, vector<64x64xbf16>, vector<16x64xf32> -> vector<16x64xf32>
    %c0_40 = arith.constant 0 : index
    %c1_41 = arith.constant 1 : index
    %c0_42 = arith.constant 0 : index
    %25 = vector.load %arg14[%c0_40, %c1_41, %c0_42] : memref<1x17x64xbf16, #tpu.memory_space<vmem>>, vector<1x16x64xbf16>
    %26 = vector.shape_cast %25 : vector<1x16x64xbf16> to vector<16x64xbf16>
    %c1_43 = arith.constant 1 : index
    %c0_44 = arith.constant 0 : index
    %c0_45 = arith.constant 0 : index
    %27 = vector.load %arg4[%c1_43, %c0_44, %c0_45] : memref<2x64x64xbf16, #tpu.memory_space<vmem>>, vector<1x64x64xbf16>
    %28 = vector.shape_cast %27 : vector<1x64x64xbf16> to vector<64x64xbf16>
    %cst_46 = arith.constant dense<0.000000e+00> : vector<16x64xf32>
    %29 = tpu.matmul %26, %28, %cst_46 {dimension_numbers = #tpu.dot_dimension_numbers<[1], [0], [0], [1], [0, 0, 1, 1], [], []>} : vector<16x64xbf16>, vector<64x64xbf16>, vector<16x64xf32> -> vector<16x64xf32>
    %30 = arith.addf %24, %29 : vector<16x64xf32>
    %c0_47 = arith.constant 0 : index
    %c0_48 = arith.constant 0 : index
    %31 = vector.load %arg8[%c0_47, %c0_48] : memref<1x64xf32, #tpu.memory_space<vmem>>, vector<1x64xf32>
    %32 = vector.broadcast %31 : vector<1x64xf32> to vector<16x64xf32>
    %33 = arith.addf %30, %32 : vector<16x64xf32>
    %34 = arith.truncf %33 : vector<16x64xf32> to vector<16x64xbf16>
    %35 = vector.shape_cast %34 : vector<16x64xbf16> to vector<1x16x64xbf16>
    %c0_49 = arith.constant 0 : index
    %c1_50 = arith.constant 1 : index
    %c0_51 = arith.constant 0 : index
    %36 = vector.load %arg15[%c0_49, %c1_50, %c0_51] : memref<1x18x64xbf16, #tpu.memory_space<vmem>>, vector<1x16x64xbf16>
    tpu.vector_store %arg15[%c0_49, %c1_50, %c0_51], %35 {strides = array<i32>} : memref<1x18x64xbf16, #tpu.memory_space<vmem>>, vector<1x16x64xbf16>,
    %c1_52 = arith.constant 1 : index
    %c0_53 = arith.constant 0 : index
    %c0_54 = arith.constant 0 : index
    %37 = vector.load %arg5[%c1_52, %c0_53, %c0_54] : memref<3x64x64xbf16, #tpu.memory_space<vmem>>, vector<1x64x64xbf16>
    %38 = vector.shape_cast %37 : vector<1x64x64xbf16> to vector<64x64xbf16>
    %cst_55 = arith.constant dense<0.000000e+00> : vector<16x64xf32>
    %39 = tpu.matmul %34, %38, %cst_55 {dimension_numbers = #tpu.dot_dimension_numbers<[1], [0], [0], [1], [0, 0, 1, 1], [], []>} : vector<16x64xbf16>, vector<64x64xbf16>, vector<16x64xf32> -> vector<16x64xf32>
    %c1_56 = arith.constant 1 : index
    %c0_57 = arith.constant 0 : index
    %c0_58 = arith.constant 0 : index
    %40 = vector.load %arg6[%c1_56, %c0_57, %c0_58] : memref<3x64x64xbf16, #tpu.memory_space<vmem>>, vector<1x64x64xbf16>
    %41 = vector.shape_cast %40 : vector<1x64x64xbf16> to vector<64x64xbf16>
    %cst_59 = arith.constant dense<0.000000e+00> : vector<16x64xf32>
    %42 = tpu.matmul %13, %41, %cst_59 {dimension_numbers = #tpu.dot_dimension_numbers<[1], [0], [0], [1], [0, 0, 1, 1], [], []>} : vector<16x64xbf16>, vector<64x64xbf16>, vector<16x64xf32> -> vector<16x64xf32>
    %43 = arith.addf %39, %42 : vector<16x64xf32>
    %c0_60 = arith.constant 0 : index
    %c0_61 = arith.constant 0 : index
    %c0_62 = arith.constant 0 : index
    %44 = vector.load %arg15[%c0_60, %c0_61, %c0_62] : memref<1x18x64xbf16, #tpu.memory_space<vmem>>, vector<1x16x64xbf16>
    %45 = vector.shape_cast %44 : vector<1x16x64xbf16> to vector<16x64xbf16>
    %c0_63 = arith.constant 0 : index
    %c0_64 = arith.constant 0 : index
    %c0_65 = arith.constant 0 : index
    %46 = vector.load %arg5[%c0_63, %c0_64, %c0_65] : memref<3x64x64xbf16, #tpu.memory_space<vmem>>, vector<1x64x64xbf16>
    %47 = vector.shape_cast %46 : vector<1x64x64xbf16> to vector<64x64xbf16>
    %cst_66 = arith.constant dense<0.000000e+00> : vector<16x64xf32>
    %48 = tpu.matmul %45, %47, %cst_66 {dimension_numbers = #tpu.dot_dimension_numbers<[1], [0], [0], [1], [0, 0, 1, 1], [], []>} : vector<16x64xbf16>, vector<64x64xbf16>, vector<16x64xf32> -> vector<16x64xf32>
    %49 = arith.addf %43, %48 : vector<16x64xf32>
    %c0_67 = arith.constant 0 : index
    %c0_68 = arith.constant 0 : index
    %c0_69 = arith.constant 0 : index
    %50 = vector.load %arg17[%c0_67, %c0_68, %c0_69] : memref<1x18x64xbf16, #tpu.memory_space<vmem>>, vector<1x16x64xbf16>
    %51 = vector.shape_cast %50 : vector<1x16x64xbf16> to vector<16x64xbf16>
    %c0_70 = arith.constant 0 : index
    %c0_71 = arith.constant 0 : index
    %c0_72 = arith.constant 0 : index
    %52 = vector.load %arg6[%c0_70, %c0_71, %c0_72] : memref<3x64x64xbf16, #tpu.memory_space<vmem>>, vector<1x64x64xbf16>
    %53 = vector.shape_cast %52 : vector<1x64x64xbf16> to vector<64x64xbf16>
    %cst_73 = arith.constant dense<0.000000e+00> : vector<16x64xf32>
    %54 = tpu.matmul %51, %53, %cst_73 {dimension_numbers = #tpu.dot_dimension_numbers<[1], [0], [0], [1], [0, 0, 1, 1], [], []>} : vector<16x64xbf16>, vector<64x64xbf16>, vector<16x64xf32> -> vector<16x64xf32>
    %55 = arith.addf %49, %54 : vector<16x64xf32>
    %c0_74 = arith.constant 0 : index
    %c2 = arith.constant 2 : index
    %c0_75 = arith.constant 0 : index
    %56 = vector.load %arg15[%c0_74, %c2, %c0_75] : memref<1x18x64xbf16, #tpu.memory_space<vmem>>, vector<1x16x64xbf16>
    %57 = vector.shape_cast %56 : vector<1x16x64xbf16> to vector<16x64xbf16>
    %c2_76 = arith.constant 2 : index
    %c0_77 = arith.constant 0 : index
    %c0_78 = arith.constant 0 : index
    %58 = vector.load %arg5[%c2_76, %c0_77, %c0_78] : memref<3x64x64xbf16, #tpu.memory_space<vmem>>, vector<1x64x64xbf16>
    %59 = vector.shape_cast %58 : vector<1x64x64xbf16> to vector<64x64xbf16>
    %cst_79 = arith.constant dense<0.000000e+00> : vector<16x64xf32>
    %60 = tpu.matmul %57, %59, %cst_79 {dimension_numbers = #tpu.dot_dimension_numbers<[1], [0], [0], [1], [0, 0, 1, 1], [], []>} : vector<16x64xbf16>, vector<64x64xbf16>, vector<16x64xf32> -> vector<16x64xf32>
    %61 = arith.addf %55, %60 : vector<16x64xf32>
    %c0_80 = arith.constant 0 : index
    %c2_81 = arith.constant 2 : index
    %c0_82 = arith.constant 0 : index
    %62 = vector.load %arg17[%c0_80, %c2_81, %c0_82] : memref<1x18x64xbf16, #tpu.memory_space<vmem>>, vector<1x16x64xbf16>
    %63 = vector.shape_cast %62 : vector<1x16x64xbf16> to vector<16x64xbf16>
    %c2_83 = arith.constant 2 : index
    %c0_84 = arith.constant 0 : index
    %c0_85 = arith.constant 0 : index
    %64 = vector.load %arg6[%c2_83, %c0_84, %c0_85] : memref<3x64x64xbf16, #tpu.memory_space<vmem>>, vector<1x64x64xbf16>
    %65 = vector.shape_cast %64 : vector<1x64x64xbf16> to vector<64x64xbf16>
    %cst_86 = arith.constant dense<0.000000e+00> : vector<16x64xf32>
    %66 = tpu.matmul %63, %65, %cst_86 {dimension_numbers = #tpu.dot_dimension_numbers<[1], [0], [0], [1], [0, 0, 1, 1], [], []>} : vector<16x64xbf16>, vector<64x64xbf16>, vector<16x64xf32> -> vector<16x64xf32>
    %67 = arith.addf %61, %66 : vector<16x64xf32>
    %c0_87 = arith.constant 0 : index
    %c0_88 = arith.constant 0 : index
    %68 = vector.load %arg9[%c0_87, %c0_88] : memref<1x64xf32, #tpu.memory_space<vmem>>, vector<1x64xf32>
    %69 = vector.broadcast %68 : vector<1x64xf32> to vector<16x64xf32>
    %70 = arith.addf %67, %69 : vector<16x64xf32>
    %cst_89 = arith.constant 0.000000e+00 : f32
    %71 = vector.broadcast %cst_89 : f32 to vector<16x64xf32>
    %72 = arith.maximumf %70, %71 : vector<16x64xf32>
    %73 = arith.truncf %72 : vector<16x64xf32> to vector<16x64xbf16>
    %74 = vector.shape_cast %73 : vector<16x64xbf16> to vector<1x16x64xbf16>
    %c0_90 = arith.constant 0 : index
    %c1_91 = arith.constant 1 : index
    %c0_92 = arith.constant 0 : index
    %75 = vector.load %arg16[%c0_90, %c1_91, %c0_92] : memref<1x18x64xbf16, #tpu.memory_space<vmem>>, vector<1x16x64xbf16>
    tpu.vector_store %arg16[%c0_90, %c1_91, %c0_92], %74 {strides = array<i32>} : memref<1x18x64xbf16, #tpu.memory_space<vmem>>, vector<1x16x64xbf16>,
    %c1_93 = arith.constant 1 : index
    %c0_94 = arith.constant 0 : index
    %c0_95 = arith.constant 0 : index
    %76 = vector.load %arg7[%c1_93, %c0_94, %c0_95] : memref<3x64x64xbf16, #tpu.memory_space<vmem>>, vector<1x64x64xbf16>
    %77 = vector.shape_cast %76 : vector<1x64x64xbf16> to vector<64x64xbf16>
    %cst_96 = arith.constant dense<0.000000e+00> : vector<16x64xf32>
    %78 = tpu.matmul %73, %77, %cst_96 {dimension_numbers = #tpu.dot_dimension_numbers<[1], [0], [0], [1], [0, 0, 1, 1], [], []>} : vector<16x64xbf16>, vector<64x64xbf16>, vector<16x64xf32> -> vector<16x64xf32>
    %c0_97 = arith.constant 0 : index
    %c0_98 = arith.constant 0 : index
    %c0_99 = arith.constant 0 : index
    %79 = vector.load %arg16[%c0_97, %c0_98, %c0_99] : memref<1x18x64xbf16, #tpu.memory_space<vmem>>, vector<1x16x64xbf16>
    %80 = vector.shape_cast %79 : vector<1x16x64xbf16> to vector<16x64xbf16>
    %c0_100 = arith.constant 0 : index
    %c0_101 = arith.constant 0 : index
    %c0_102 = arith.constant 0 : index
    %81 = vector.load %arg7[%c0_100, %c0_101, %c0_102] : memref<3x64x64xbf16, #tpu.memory_space<vmem>>, vector<1x64x64xbf16>
    %82 = vector.shape_cast %81 : vector<1x64x64xbf16> to vector<64x64xbf16>
    %cst_103 = arith.constant dense<0.000000e+00> : vector<16x64xf32>
    %83 = tpu.matmul %80, %82, %cst_103 {dimension_numbers = #tpu.dot_dimension_numbers<[1], [0], [0], [1], [0, 0, 1, 1], [], []>} : vector<16x64xbf16>, vector<64x64xbf16>, vector<16x64xf32> -> vector<16x64xf32>
    %84 = arith.addf %78, %83 : vector<16x64xf32>
    %c0_104 = arith.constant 0 : index
    %c2_105 = arith.constant 2 : index
    %c0_106 = arith.constant 0 : index
    %85 = vector.load %arg16[%c0_104, %c2_105, %c0_106] : memref<1x18x64xbf16, #tpu.memory_space<vmem>>, vector<1x16x64xbf16>
    %86 = vector.shape_cast %85 : vector<1x16x64xbf16> to vector<16x64xbf16>
    %c2_107 = arith.constant 2 : index
    %c0_108 = arith.constant 0 : index
    %c0_109 = arith.constant 0 : index
    %87 = vector.load %arg7[%c2_107, %c0_108, %c0_109] : memref<3x64x64xbf16, #tpu.memory_space<vmem>>, vector<1x64x64xbf16>
    %88 = vector.shape_cast %87 : vector<1x64x64xbf16> to vector<64x64xbf16>
    %cst_110 = arith.constant dense<0.000000e+00> : vector<16x64xf32>
    %89 = tpu.matmul %86, %88, %cst_110 {dimension_numbers = #tpu.dot_dimension_numbers<[1], [0], [0], [1], [0, 0, 1, 1], [], []>} : vector<16x64xbf16>, vector<64x64xbf16>, vector<16x64xf32> -> vector<16x64xf32>
    %90 = arith.addf %84, %89 : vector<16x64xf32>
    %c0_111 = arith.constant 0 : index
    %c0_112 = arith.constant 0 : index
    %91 = vector.load %arg10[%c0_111, %c0_112] : memref<1x64xf32, #tpu.memory_space<vmem>>, vector<1x64xf32>
    %92 = vector.broadcast %91 : vector<1x64xf32> to vector<16x64xf32>
    %93 = arith.addf %90, %92 : vector<16x64xf32>
    %cst_113 = arith.constant 0.000000e+00 : f32
    %94 = vector.broadcast %cst_113 : f32 to vector<16x64xf32>
    %95 = arith.maximumf %93, %94 : vector<16x64xf32>
    %c0_114 = arith.constant 0 : index
    %c0_115 = arith.constant 0 : index
    %96 = vector.load %arg11[%c0_114, %c0_115] : memref<1x64xf32, #tpu.memory_space<vmem>>, vector<1x64xf32>
    %97 = vector.broadcast %96 : vector<1x64xf32> to vector<16x64xf32>
    %98 = arith.mulf %95, %97 : vector<16x64xf32>
    %c0_116 = arith.constant 0 : index
    %c0_117 = arith.constant 0 : index
    %99 = vector.load %arg12[%c0_116, %c0_117] : memref<1x64xf32, #tpu.memory_space<vmem>>, vector<1x64xf32>
    %100 = vector.broadcast %99 : vector<1x64xf32> to vector<16x64xf32>
    %101 = arith.addf %98, %100 : vector<16x64xf32>
    %102 = vector.shape_cast %101 : vector<16x64xf32> to vector<1x16x64xf32>
    %c0_118 = arith.constant 0 : index
    %c0_119 = arith.constant 0 : index
    %c0_120 = arith.constant 0 : index
    %c0_121 = arith.constant 0 : index
    %103 = vector.load %arg13[%c0_118, %c0_119, %c0_120, %c0_121] : memref<1x1x16x64xf32, #tpu.memory_space<vmem>>, vector<1x1x16x64xf32>
    %104 = vector.shape_cast %103 : vector<1x1x16x64xf32> to vector<1x16x64xf32>
    %105 = vector.shape_cast %102 : vector<1x16x64xf32> to vector<1x1x16x64xf32>
    tpu.vector_store %arg13[%c0_118, %c0_119, %c0_120, %c0_121], %105 {strides = array<i32>} : memref<1x1x16x64xf32, #tpu.memory_space<vmem>>, vector<1x1x16x64xf32>,
    return
  }
  func.func @transform_0(%arg0: i32) -> (i32, i32, i32, i32) {
    %c0_i32 = arith.constant 0 : i32
    %c0_i32_0 = arith.constant 0 : i32
    %c0_i32_1 = arith.constant 0 : i32
    %c0_i32_2 = arith.constant 0 : i32
    return %arg0, %c0_i32, %c0_i32_0, %c0_i32_1 : i32, i32, i32, i32
  }
  func.func @transform_1(%arg0: i32) -> (i32, i32, i32, i32) {
    %c0_i32 = arith.constant 0 : i32
    %c0_i32_0 = arith.constant 0 : i32
    %c0_i32_1 = arith.constant 0 : i32
    %c0_i32_2 = arith.constant 0 : i32
    return %arg0, %c0_i32, %c0_i32_0, %c0_i32_1 : i32, i32, i32, i32
  }
  func.func @transform_2(%arg0: i32) -> (i32, i32) {
    %c0_i32 = arith.constant 0 : i32
    %c0_i32_0 = arith.constant 0 : i32
    %c0_i32_1 = arith.constant 0 : i32
    return %c0_i32, %c0_i32_0 : i32, i32
  }
  func.func @transform_3(%arg0: i32) -> (i32, i32, i32) {
    %c0_i32 = arith.constant 0 : i32
    %c0_i32_0 = arith.constant 0 : i32
    %c0_i32_1 = arith.constant 0 : i32
    %c0_i32_2 = arith.constant 0 : i32
    return %c0_i32, %c0_i32_0, %c0_i32_1 : i32, i32, i32
  }
  func.func @transform_4(%arg0: i32) -> (i32, i32, i32) {
    %c0_i32 = arith.constant 0 : i32
    %c0_i32_0 = arith.constant 0 : i32
    %c0_i32_1 = arith.constant 0 : i32
    %c0_i32_2 = arith.constant 0 : i32
    return %c0_i32, %c0_i32_0, %c0_i32_1 : i32, i32, i32
  }
  func.func @transform_5(%arg0: i32) -> (i32, i32, i32) {
    %c0_i32 = arith.constant 0 : i32
    %c0_i32_0 = arith.constant 0 : i32
    %c0_i32_1 = arith.constant 0 : i32
    %c0_i32_2 = arith.constant 0 : i32
    return %c0_i32, %c0_i32_0, %c0_i32_1 : i32, i32, i32
  }
  func.func @transform_6(%arg0: i32) -> (i32, i32, i32) {
    %c0_i32 = arith.constant 0 : i32
    %c0_i32_0 = arith.constant 0 : i32
    %c0_i32_1 = arith.constant 0 : i32
    %c0_i32_2 = arith.constant 0 : i32
    return %c0_i32, %c0_i32_0, %c0_i32_1 : i32, i32, i32
  }
  func.func @transform_7(%arg0: i32) -> (i32, i32) {
    %c0_i32 = arith.constant 0 : i32
    %c0_i32_0 = arith.constant 0 : i32
    %c0_i32_1 = arith.constant 0 : i32
    return %c0_i32, %c0_i32_0 : i32, i32
  }
  func.func @transform_8(%arg0: i32) -> (i32, i32) {
    %c0_i32 = arith.constant 0 : i32
    %c0_i32_0 = arith.constant 0 : i32
    %c0_i32_1 = arith.constant 0 : i32
    return %c0_i32, %c0_i32_0 : i32, i32
  }
  func.func @transform_9(%arg0: i32) -> (i32, i32) {
    %c0_i32 = arith.constant 0 : i32
    %c0_i32_0 = arith.constant 0 : i32
    %c0_i32_1 = arith.constant 0 : i32
    return %c0_i32, %c0_i32_0 : i32, i32
  }
  func.func @transform_10(%arg0: i32) -> (i32, i32) {
    %c0_i32 = arith.constant 0 : i32
    %c0_i32_0 = arith.constant 0 : i32
    %c0_i32_1 = arith.constant 0 : i32
    return %c0_i32, %c0_i32_0 : i32, i32
  }
  func.func @transform_11(%arg0: i32) -> (i32, i32) {
    %c0_i32 = arith.constant 0 : i32
    %c0_i32_0 = arith.constant 0 : i32
    %c0_i32_1 = arith.constant 0 : i32
    return %c0_i32, %c0_i32_0 : i32, i32
  }
  func.func @transform_12(%arg0: i32) -> (i32, i32, i32, i32) {
    %c0_i32 = arith.constant 0 : i32
    %c0_i32_0 = arith.constant 0 : i32
    %c0_i32_1 = arith.constant 0 : i32
    %c0_i32_2 = arith.constant 0 : i32
    return %arg0, %c0_i32, %c0_i32_0, %c0_i32_1 : i32, i32, i32, i32
  }
}

module attributes {stable_mosaic.version = 11 : i64} {
  func.func @kernel(%arg0: i32, %arg1: memref<1x1x8x64xbf16, #tpu.memory_space<vmem>>, %arg2: memref<1x1x16x64xbf16, #tpu.memory_space<vmem>>, %arg3: memref<16x8xbf16, #tpu.memory_space<vmem>>, %arg4: memref<2x64x64xbf16, #tpu.memory_space<vmem>>, %arg5: memref<3x64x64xbf16, #tpu.memory_space<vmem>>, %arg6: memref<3x64x64xbf16, #tpu.memory_space<vmem>>, %arg7: memref<3x64x64xbf16, #tpu.memory_space<vmem>>, %arg8: memref<1x64xf32, #tpu.memory_space<vmem>>, %arg9: memref<1x64xf32, #tpu.memory_space<vmem>>, %arg10: memref<1x64xf32, #tpu.memory_space<vmem>>, %arg11: memref<1x64xf32, #tpu.memory_space<vmem>>, %arg12: memref<1x64xf32, #tpu.memory_space<vmem>>, %arg13: memref<1x1x16x64xf32, #tpu.memory_space<vmem>>, %arg14: memref<1x17x64xbf16, #tpu.memory_space<vmem>>, %arg15: memref<1x18x64xbf16, #tpu.memory_space<vmem>>, %arg16: memref<1x18x64xbf16, #tpu.memory_space<vmem>>, %arg17: memref<1x18x64xbf16, #tpu.memory_space<vmem>>) attributes {dimension_semantics = [#tpu.dimension_semantics<parallel>], iteration_bounds = array<i64: 2>, scalar_prefetch = 0 : i64, scratch_operands = 4 : i64, tpu.core_type = #tpu.core_type<tc>, window_params = [{transform_indices = @transform_0, window_bounds = array<i64: 1, 1, 8, 64>}, {transform_indices = @transform_1, window_bounds = array<i64: 1, 1, 16, 64>}, {pipeline_mode = #tpu.pipeline_mode<synchronous>, transform_indices = @transform_2, window_bounds = array<i64: 16, 8>}, {pipeline_mode = #tpu.pipeline_mode<synchronous>, transform_indices = @transform_3, window_bounds = array<i64: 2, 64, 64>}, {pipeline_mode = #tpu.pipeline_mode<synchronous>, transform_indices = @transform_4, window_bounds = array<i64: 3, 64, 64>}, {pipeline_mode = #tpu.pipeline_mode<synchronous>, transform_indices = @transform_5, window_bounds = array<i64: 3, 64, 64>}, {pipeline_mode = #tpu.pipeline_mode<synchronous>, transform_indices = @transform_6, window_bounds = array<i64: 3, 64, 64>}, {pipeline_mode = #tpu.pipeline_mode<synchronous>, transform_indices = @transform_7, window_bounds = array<i64: 1, 64>}, {pipeline_mode = #tpu.pipeline_mode<synchronous>, transform_indices = @transform_8, window_bounds = array<i64: 1, 64>}, {pipeline_mode = #tpu.pipeline_mode<synchronous>, transform_indices = @transform_9, window_bounds = array<i64: 1, 64>}, {pipeline_mode = #tpu.pipeline_mode<synchronous>, transform_indices = @transform_10, window_bounds = array<i64: 1, 64>}, {pipeline_mode = #tpu.pipeline_mode<synchronous>, transform_indices = @transform_11, window_bounds = array<i64: 1, 64>}, {transform_indices = @transform_12, window_bounds = array<i64: 1, 1, 16, 64>}]} {
    %cst = arith.constant 0.000000e+00 : bf16
    %0 = vector.broadcast %cst : bf16 to vector<1x1x64xbf16>
    %cst_0 = arith.constant 0.000000e+00 : bf16
    %1 = vector.broadcast %cst_0 : bf16 to vector<1x1x64xbf16>
    %cst_1 = arith.constant 0.000000e+00 : bf16
    %2 = vector.broadcast %cst_1 : bf16 to vector<1x1x64xbf16>
    %c0 = arith.constant 0 : index
    %c16 = arith.constant 16 : index
    %c0_2 = arith.constant 0 : index
    %3 = vector.load %arg14[%c0, %c16, %c0_2] : memref<1x17x64xbf16, #tpu.memory_space<vmem>>, vector<1x1x64xbf16>
    tpu.vector_store %arg14[%c0, %c16, %c0_2], %2 {strides = array<i32>} : memref<1x17x64xbf16, #tpu.memory_space<vmem>>, vector<1x1x64xbf16>,
    %c0_3 = arith.constant 0 : index
    %c0_4 = arith.constant 0 : index
    %c0_5 = arith.constant 0 : index
    %4 = vector.load %arg15[%c0_3, %c0_4, %c0_5] : memref<1x18x64xbf16, #tpu.memory_space<vmem>>, vector<1x1x64xbf16>
    tpu.vector_store %arg15[%c0_3, %c0_4, %c0_5], %0 {strides = array<i32>} : memref<1x18x64xbf16, #tpu.memory_space<vmem>>, vector<1x1x64xbf16>,
    %c0_6 = arith.constant 0 : index
    %c17 = arith.constant 17 : index
    %c0_7 = arith.constant 0 : index
    %5 = vector.load %arg15[%c0_6, %c17, %c0_7] : memref<1x18x64xbf16, #tpu.memory_space<vmem>>, vector<1x1x64xbf16>
    tpu.vector_store %arg15[%c0_6, %c17, %c0_7], %0 {strides = array<i32>} : memref<1x18x64xbf16, #tpu.memory_space<vmem>>, vector<1x1x64xbf16>,
    %c0_8 = arith.constant 0 : index
    %c0_9 = arith.constant 0 : index
    %c0_10 = arith.constant 0 : index
    %6 = vector.load %arg16[%c0_8, %c0_9, %c0_10] : memref<1x18x64xbf16, #tpu.memory_space<vmem>>, vector<1x1x64xbf16>
    tpu.vector_store %arg16[%c0_8, %c0_9, %c0_10], %0 {strides = array<i32>} : memref<1x18x64xbf16, #tpu.memory_space<vmem>>, vector<1x1x64xbf16>,
    %c0_11 = arith.constant 0 : index
    %c17_12 = arith.constant 17 : index
    %c0_13 = arith.constant 0 : index
    %7 = vector.load %arg16[%c0_11, %c17_12, %c0_13] : memref<1x18x64xbf16, #tpu.memory_space<vmem>>, vector<1x1x64xbf16>
    tpu.vector_store %arg16[%c0_11, %c17_12, %c0_13], %0 {strides = array<i32>} : memref<1x18x64xbf16, #tpu.memory_space<vmem>>, vector<1x1x64xbf16>,
    %c0_14 = arith.constant 0 : index
    %c0_15 = arith.constant 0 : index
    %c0_16 = arith.constant 0 : index
    %8 = vector.load %arg17[%c0_14, %c0_15, %c0_16] : memref<1x18x64xbf16, #tpu.memory_space<vmem>>, vector<1x1x64xbf16>
    tpu.vector_store %arg17[%c0_14, %c0_15, %c0_16], %1 {strides = array<i32>} : memref<1x18x64xbf16, #tpu.memory_space<vmem>>, vector<1x1x64xbf16>,
    %c0_17 = arith.constant 0 : index
    %c17_18 = arith.constant 17 : index
    %c0_19 = arith.constant 0 : index
    %9 = vector.load %arg17[%c0_17, %c17_18, %c0_19] : memref<1x18x64xbf16, #tpu.memory_space<vmem>>, vector<1x1x64xbf16>
    tpu.vector_store %arg17[%c0_17, %c17_18, %c0_19], %1 {strides = array<i32>} : memref<1x18x64xbf16, #tpu.memory_space<vmem>>, vector<1x1x64xbf16>,
    %c0_20 = arith.constant 0 : index
    %c0_21 = arith.constant 0 : index
    %c0_22 = arith.constant 0 : index
    %c0_23 = arith.constant 0 : index
    %10 = vector.load %arg2[%c0_20, %c0_21, %c0_22, %c0_23] : memref<1x1x16x64xbf16, #tpu.memory_space<vmem>>, vector<1x1x16x64xbf16>
    %11 = vector.shape_cast %10 : vector<1x1x16x64xbf16> to vector<1x16x64xbf16>
    %c0_24 = arith.constant 0 : index
    %c1 = arith.constant 1 : index
    %c0_25 = arith.constant 0 : index
    %12 = vector.load %arg17[%c0_24, %c1, %c0_25] : memref<1x18x64xbf16, #tpu.memory_space<vmem>>, vector<1x16x64xbf16>
    tpu.vector_store %arg17[%c0_24, %c1, %c0_25], %11 {strides = array<i32>} : memref<1x18x64xbf16, #tpu.memory_space<vmem>>, vector<1x16x64xbf16>,
    %13 = vector.shape_cast %11 : vector<1x16x64xbf16> to vector<16x64xbf16>
    %c0_26 = arith.constant 0 : index
    %c0_27 = arith.constant 0 : index
    %c0_28 = arith.constant 0 : index
    %c0_29 = arith.constant 0 : index
    %14 = vector.load %arg1[%c0_26, %c0_27, %c0_28, %c0_29] : memref<1x1x8x64xbf16, #tpu.memory_space<vmem>>, vector<1x1x8x64xbf16>
    %15 = vector.shape_cast %14 : vector<1x1x8x64xbf16> to vector<1x8x64xbf16>
    %16 = vector.shape_cast %15 : vector<1x8x64xbf16> to vector<8x64xbf16>
    %c0_30 = arith.constant 0 : index
    %c0_31 = arith.constant 0 : index
    %17 = vector.load %arg3[%c0_30, %c0_31] : memref<16x8xbf16, #tpu.memory_space<vmem>>, vector<16x8xbf16>
    %cst_32 = arith.constant dense<0.000000e+00> : vector<16x64xf32>
    %18 = tpu.matmul %17, %16, %cst_32 {dimension_numbers = #tpu.dot_dimension_numbers<[1], [0], [0], [1], [0, 0, 1, 1], [], []>} : vector<16x8xbf16>, vector<8x64xbf16>, vector<16x64xf32> -> vector<16x64xf32>
    %19 = arith.truncf %18 : vector<16x64xf32> to vector<16x64xbf16>
    %20 = vector.shape_cast %19 : vector<16x64xbf16> to vector<1x16x64xbf16>
    %c0_33 = arith.constant 0 : index
    %c0_34 = arith.constant 0 : index
    %c0_35 = arith.constant 0 : index
    %21 = vector.load %arg14[%c0_33, %c0_34, %c0_35] : memref<1x17x64xbf16, #tpu.memory_space<vmem>>, vector<1x16x64xbf16>
    tpu.vector_store %arg14[%c0_33, %c0_34, %c0_35], %20 {strides = array<i32>} : memref<1x17x64xbf16, #tpu.memory_space<vmem>>, vector<1x16x64xbf16>,
    %c0_36 = arith.constant 0 : index
    %c0_37 = arith.constant 0 : index
    %c0_38 = arith.constant 0 : index
    %22 = vector.load %arg4[%c0_36, %c0_37, %c0_38] : memref<2x64x64xbf16, #tpu.memory_space<vmem>>, vector<1x64x64xbf16>
    %23 = vector.shape_cast %22 : vector<1x64x64xbf16> to vector<64x64xbf16>
    %cst_39 = arith.constant dense<0.000000e+00> : vector<16x64xf32>
    %24 = tpu.matmul %19, %23, %cst_39 {dimension_numbers = #tpu.dot_dimension_numbers<[1], [0], [0], [1], [0, 0, 1, 1], [], []>} : vector<16x64xbf16>, vector<64x64xbf16>, vector<16x64xf32> -> vector<16x64xf32>
    %c0_40 = arith.constant 0 : index
    %c1_41 = arith.constant 1 : index
    %c0_42 = arith.constant 0 : index
    %25 = vector.load %arg14[%c0_40, %c1_41, %c0_42] : memref<1x17x64xbf16, #tpu.memory_space<vmem>>, vector<1x16x64xbf16>
    %26 = vector.shape_cast %25 : vector<1x16x64xbf16> to vector<16x64xbf16>
    %c1_43 = arith.constant 1 : index
    %c0_44 = arith.constant 0 : index
    %c0_45 = arith.constant 0 : index
    %27 = vector.load %arg4[%c1_43, %c0_44, %c0_45] : memref<2x64x64xbf16, #tpu.memory_space<vmem>>, vector<1x64x64xbf16>
    %28 = vector.shape_cast %27 : vector<1x64x64xbf16> to vector<64x64xbf16>
    %cst_46 = arith.constant dense<0.000000e+00> : vector<16x64xf32>
    %29 = tpu.matmul %26, %28, %cst_46 {dimension_numbers = #tpu.dot_dimension_numbers<[1], [0], [0], [1], [0, 0, 1, 1], [], []>} : vector<16x64xbf16>, vector<64x64xbf16>, vector<16x64xf32> -> vector<16x64xf32>
    %30 = arith.addf %24, %29 : vector<16x64xf32>
    %c0_47 = arith.constant 0 : index
    %c0_48 = arith.constant 0 : index
    %31 = vector.load %arg8[%c0_47, %c0_48] : memref<1x64xf32, #tpu.memory_space<vmem>>, vector<1x64xf32>
    %32 = vector.broadcast %31 : vector<1x64xf32> to vector<16x64xf32>
    %33 = arith.addf %30, %32 : vector<16x64xf32>
    %34 = arith.truncf %33 : vector<16x64xf32> to vector<16x64xbf16>
    %35 = vector.shape_cast %34 : vector<16x64xbf16> to vector<1x16x64xbf16>
    %c0_49 = arith.constant 0 : index
    %c1_50 = arith.constant 1 : index
    %c0_51 = arith.constant 0 : index
    %36 = vector.load %arg15[%c0_49, %c1_50, %c0_51] : memref<1x18x64xbf16, #tpu.memory_space<vmem>>, vector<1x16x64xbf16>
    tpu.vector_store %arg15[%c0_49, %c1_50, %c0_51], %35 {strides = array<i32>} : memref<1x18x64xbf16, #tpu.memory_space<vmem>>, vector<1x16x64xbf16>,
    %c1_52 = arith.constant 1 : index
    %c0_53 = arith.constant 0 : index
    %c0_54 = arith.constant 0 : index
    %37 = vector.load %arg5[%c1_52, %c0_53, %c0_54] : memref<3x64x64xbf16, #tpu.memory_space<vmem>>, vector<1x64x64xbf16>
    %38 = vector.shape_cast %37 : vector<1x64x64xbf16> to vector<64x64xbf16>
    %cst_55 = arith.constant dense<0.000000e+00> : vector<16x64xf32>
    %39 = tpu.matmul %34, %38, %cst_55 {dimension_numbers = #tpu.dot_dimension_numbers<[1], [0], [0], [1], [0, 0, 1, 1], [], []>} : vector<16x64xbf16>, vector<64x64xbf16>, vector<16x64xf32> -> vector<16x64xf32>
    %c1_56 = arith.constant 1 : index
    %c0_57 = arith.constant 0 : index
    %c0_58 = arith.constant 0 : index
    %40 = vector.load %arg6[%c1_56, %c0_57, %c0_58] : memref<3x64x64xbf16, #tpu.memory_space<vmem>>, vector<1x64x64xbf16>
    %41 = vector.shape_cast %40 : vector<1x64x64xbf16> to vector<64x64xbf16>
    %cst_59 = arith.constant dense<0.000000e+00> : vector<16x64xf32>
    %42 = tpu.matmul %13, %41, %cst_59 {dimension_numbers = #tpu.dot_dimension_numbers<[1], [0], [0], [1], [0, 0, 1, 1], [], []>} : vector<16x64xbf16>, vector<64x64xbf16>, vector<16x64xf32> -> vector<16x64xf32>
    %43 = arith.addf %39, %42 : vector<16x64xf32>
    %c0_60 = arith.constant 0 : index
    %c0_61 = arith.constant 0 : index
    %c0_62 = arith.constant 0 : index
    %44 = vector.load %arg15[%c0_60, %c0_61, %c0_62] : memref<1x18x64xbf16, #tpu.memory_space<vmem>>, vector<1x16x64xbf16>
    %45 = vector.shape_cast %44 : vector<1x16x64xbf16> to vector<16x64xbf16>
    %c0_63 = arith.constant 0 : index
    %c0_64 = arith.constant 0 : index
    %c0_65 = arith.constant 0 : index
    %46 = vector.load %arg5[%c0_63, %c0_64, %c0_65] : memref<3x64x64xbf16, #tpu.memory_space<vmem>>, vector<1x64x64xbf16>
    %47 = vector.shape_cast %46 : vector<1x64x64xbf16> to vector<64x64xbf16>
    %cst_66 = arith.constant dense<0.000000e+00> : vector<16x64xf32>
    %48 = tpu.matmul %45, %47, %cst_66 {dimension_numbers = #tpu.dot_dimension_numbers<[1], [0], [0], [1], [0, 0, 1, 1], [], []>} : vector<16x64xbf16>, vector<64x64xbf16>, vector<16x64xf32> -> vector<16x64xf32>
    %49 = arith.addf %43, %48 : vector<16x64xf32>
    %c0_67 = arith.constant 0 : index
    %c0_68 = arith.constant 0 : index
    %c0_69 = arith.constant 0 : index
    %50 = vector.load %arg17[%c0_67, %c0_68, %c0_69] : memref<1x18x64xbf16, #tpu.memory_space<vmem>>, vector<1x16x64xbf16>
    %51 = vector.shape_cast %50 : vector<1x16x64xbf16> to vector<16x64xbf16>
    %c0_70 = arith.constant 0 : index
    %c0_71 = arith.constant 0 : index
    %c0_72 = arith.constant 0 : index
    %52 = vector.load %arg6[%c0_70, %c0_71, %c0_72] : memref<3x64x64xbf16, #tpu.memory_space<vmem>>, vector<1x64x64xbf16>
    %53 = vector.shape_cast %52 : vector<1x64x64xbf16> to vector<64x64xbf16>
    %cst_73 = arith.constant dense<0.000000e+00> : vector<16x64xf32>
    %54 = tpu.matmul %51, %53, %cst_73 {dimension_numbers = #tpu.dot_dimension_numbers<[1], [0], [0], [1], [0, 0, 1, 1], [], []>} : vector<16x64xbf16>, vector<64x64xbf16>, vector<16x64xf32> -> vector<16x64xf32>
    %55 = arith.addf %49, %54 : vector<16x64xf32>
    %c0_74 = arith.constant 0 : index
    %c2 = arith.constant 2 : index
    %c0_75 = arith.constant 0 : index
    %56 = vector.load %arg15[%c0_74, %c2, %c0_75] : memref<1x18x64xbf16, #tpu.memory_space<vmem>>, vector<1x16x64xbf16>
    %57 = vector.shape_cast %56 : vector<1x16x64xbf16> to vector<16x64xbf16>
    %c2_76 = arith.constant 2 : index
    %c0_77 = arith.constant 0 : index
    %c0_78 = arith.constant 0 : index
    %58 = vector.load %arg5[%c2_76, %c0_77, %c0_78] : memref<3x64x64xbf16, #tpu.memory_space<vmem>>, vector<1x64x64xbf16>
    %59 = vector.shape_cast %58 : vector<1x64x64xbf16> to vector<64x64xbf16>
    %cst_79 = arith.constant dense<0.000000e+00> : vector<16x64xf32>
    %60 = tpu.matmul %57, %59, %cst_79 {dimension_numbers = #tpu.dot_dimension_numbers<[1], [0], [0], [1], [0, 0, 1, 1], [], []>} : vector<16x64xbf16>, vector<64x64xbf16>, vector<16x64xf32> -> vector<16x64xf32>
    %61 = arith.addf %55, %60 : vector<16x64xf32>
    %c0_80 = arith.constant 0 : index
    %c2_81 = arith.constant 2 : index
    %c0_82 = arith.constant 0 : index
    %62 = vector.load %arg17[%c0_80, %c2_81, %c0_82] : memref<1x18x64xbf16, #tpu.memory_space<vmem>>, vector<1x16x64xbf16>
    %63 = vector.shape_cast %62 : vector<1x16x64xbf16> to vector<16x64xbf16>
    %c2_83 = arith.constant 2 : index
    %c0_84 = arith.constant 0 : index
    %c0_85 = arith.constant 0 : index
    %64 = vector.load %arg6[%c2_83, %c0_84, %c0_85] : memref<3x64x64xbf16, #tpu.memory_space<vmem>>, vector<1x64x64xbf16>
    %65 = vector.shape_cast %64 : vector<1x64x64xbf16> to vector<64x64xbf16>
    %cst_86 = arith.constant dense<0.000000e+00> : vector<16x64xf32>
    %66 = tpu.matmul %63, %65, %cst_86 {dimension_numbers = #tpu.dot_dimension_numbers<[1], [0], [0], [1], [0, 0, 1, 1], [], []>} : vector<16x64xbf16>, vector<64x64xbf16>, vector<16x64xf32> -> vector<16x64xf32>
    %67 = arith.addf %61, %66 : vector<16x64xf32>
    %c0_87 = arith.constant 0 : index
    %c0_88 = arith.constant 0 : index
    %68 = vector.load %arg9[%c0_87, %c0_88] : memref<1x64xf32, #tpu.memory_space<vmem>>, vector<1x64xf32>
    %69 = vector.broadcast %68 : vector<1x64xf32> to vector<16x64xf32>
    %70 = arith.addf %67, %69 : vector<16x64xf32>
    %cst_89 = arith.constant 0.000000e+00 : f32
    %71 = vector.broadcast %cst_89 : f32 to vector<16x64xf32>
    %72 = arith.maximumf %70, %71 : vector<16x64xf32>
    %73 = arith.truncf %72 : vector<16x64xf32> to vector<16x64xbf16>
    %74 = vector.shape_cast %73 : vector<16x64xbf16> to vector<1x16x64xbf16>
    %c0_90 = arith.constant 0 : index
    %c1_91 = arith.constant 1 : index
    %c0_92 = arith.constant 0 : index
    %75 = vector.load %arg16[%c0_90, %c1_91, %c0_92] : memref<1x18x64xbf16, #tpu.memory_space<vmem>>, vector<1x16x64xbf16>
    tpu.vector_store %arg16[%c0_90, %c1_91, %c0_92], %74 {strides = array<i32>} : memref<1x18x64xbf16, #tpu.memory_space<vmem>>, vector<1x16x64xbf16>,
    %c1_93 = arith.constant 1 : index
    %c0_94 = arith.constant 0 : index
    %c0_95 = arith.constant 0 : index
    %76 = vector.load %arg7[%c1_93, %c0_94, %c0_95] : memref<3x64x64xbf16, #tpu.memory_space<vmem>>, vector<1x64x64xbf16>
    %77 = vector.shape_cast %76 : vector<1x64x64xbf16> to vector<64x64xbf16>
    %cst_96 = arith.constant dense<0.000000e+00> : vector<16x64xf32>
    %78 = tpu.matmul %73, %77, %cst_96 {dimension_numbers = #tpu.dot_dimension_numbers<[1], [0], [0], [1], [0, 0, 1, 1], [], []>} : vector<16x64xbf16>, vector<64x64xbf16>, vector<16x64xf32> -> vector<16x64xf32>
    %c0_97 = arith.constant 0 : index
    %c0_98 = arith.constant 0 : index
    %c0_99 = arith.constant 0 : index
    %79 = vector.load %arg16[%c0_97, %c0_98, %c0_99] : memref<1x18x64xbf16, #tpu.memory_space<vmem>>, vector<1x16x64xbf16>
    %80 = vector.shape_cast %79 : vector<1x16x64xbf16> to vector<16x64xbf16>
    %c0_100 = arith.constant 0 : index
    %c0_101 = arith.constant 0 : index
    %c0_102 = arith.constant 0 : index
    %81 = vector.load %arg7[%c0_100, %c0_101, %c0_102] : memref<3x64x64xbf16, #tpu.memory_space<vmem>>, vector<1x64x64xbf16>
    %82 = vector.shape_cast %81 : vector<1x64x64xbf16> to vector<64x64xbf16>
    %cst_103 = arith.constant dense<0.000000e+00> : vector<16x64xf32>
    %83 = tpu.matmul %80, %82, %cst_103 {dimension_numbers = #tpu.dot_dimension_numbers<[1], [0], [0], [1], [0, 0, 1, 1], [], []>} : vector<16x64xbf16>, vector<64x64xbf16>, vector<16x64xf32> -> vector<16x64xf32>
    %84 = arith.addf %78, %83 : vector<16x64xf32>
    %c0_104 = arith.constant 0 : index
    %c2_105 = arith.constant 2 : index
    %c0_106 = arith.constant 0 : index
    %85 = vector.load %arg16[%c0_104, %c2_105, %c0_106] : memref<1x18x64xbf16, #tpu.memory_space<vmem>>, vector<1x16x64xbf16>
    %86 = vector.shape_cast %85 : vector<1x16x64xbf16> to vector<16x64xbf16>
    %c2_107 = arith.constant 2 : index
    %c0_108 = arith.constant 0 : index
    %c0_109 = arith.constant 0 : index
    %87 = vector.load %arg7[%c2_107, %c0_108, %c0_109] : memref<3x64x64xbf16, #tpu.memory_space<vmem>>, vector<1x64x64xbf16>
    %88 = vector.shape_cast %87 : vector<1x64x64xbf16> to vector<64x64xbf16>
    %cst_110 = arith.constant dense<0.000000e+00> : vector<16x64xf32>
    %89 = tpu.matmul %86, %88, %cst_110 {dimension_numbers = #tpu.dot_dimension_numbers<[1], [0], [0], [1], [0, 0, 1, 1], [], []>} : vector<16x64xbf16>, vector<64x64xbf16>, vector<16x64xf32> -> vector<16x64xf32>
    %90 = arith.addf %84, %89 : vector<16x64xf32>
    %c0_111 = arith.constant 0 : index
    %c0_112 = arith.constant 0 : index
    %91 = vector.load %arg10[%c0_111, %c0_112] : memref<1x64xf32, #tpu.memory_space<vmem>>, vector<1x64xf32>
    %92 = vector.broadcast %91 : vector<1x64xf32> to vector<16x64xf32>
    %93 = arith.addf %90, %92 : vector<16x64xf32>
    %cst_113 = arith.constant 0.000000e+00 : f32
    %94 = vector.broadcast %cst_113 : f32 to vector<16x64xf32>
    %95 = arith.maximumf %93, %94 : vector<16x64xf32>
    %c0_114 = arith.constant 0 : index
    %c0_115 = arith.constant 0 : index
    %96 = vector.load %arg11[%c0_114, %c0_115] : memref<1x64xf32, #tpu.memory_space<vmem>>, vector<1x64xf32>
    %97 = vector.broadcast %96 : vector<1x64xf32> to vector<16x64xf32>
    %98 = arith.mulf %95, %97 : vector<16x64xf32>
    %c0_116 = arith.constant 0 : index
    %c0_117 = arith.constant 0 : index
    %99 = vector.load %arg12[%c0_116, %c0_117] : memref<1x64xf32, #tpu.memory_space<vmem>>, vector<1x64xf32>
    %100 = vector.broadcast %99 : vector<1x64xf32> to vector<16x64xf32>
    %101 = arith.addf %98, %100 : vector<16x64xf32>
    %102 = vector.shape_cast %101 : vector<16x64xf32> to vector<1x16x64xf32>
    %c0_118 = arith.constant 0 : index
    %c0_119 = arith.constant 0 : index
    %c0_120 = arith.constant 0 : index
    %c0_121 = arith.constant 0 : index
    %103 = vector.load %arg13[%c0_118, %c0_119, %c0_120, %c0_121] : memref<1x1x16x64xf32, #tpu.memory_space<vmem>>, vector<1x1x16x64xf32>
    %104 = vector.shape_cast %103 : vector<1x1x16x64xf32> to vector<1x16x64xf32>
    %105 = vector.shape_cast %102 : vector<1x16x64xf32> to vector<1x1x16x64xf32>
    tpu.vector_store %arg13[%c0_118, %c0_119, %c0_120, %c0_121], %105 {strides = array<i32>} : memref<1x1x16x64xf32, #tpu.memory_space<vmem>>, vector<1x1x16x64xf32>,
    return
  }
  func.func @transform_0(%arg0: i32) -> (i32, i32, i32, i32) {
    %c0_i32 = arith.constant 0 : i32
    %c0_i32_0 = arith.constant 0 : i32
    %c0_i32_1 = arith.constant 0 : i32
    %c0_i32_2 = arith.constant 0 : i32
    return %arg0, %c0_i32, %c0_i32_0, %c0_i32_1 : i32, i32, i32, i32
  }
  func.func @transform_1(%arg0: i32) -> (i32, i32, i32, i32) {
    %c0_i32 = arith.constant 0 : i32
    %c0_i32_0 = arith.constant 0 : i32
    %c0_i32_1 = arith.constant 0 : i32
    %c0_i32_2 = arith.constant 0 : i32
    return %arg0, %c0_i32, %c0_i32_0, %c0_i32_1 : i32, i32, i32, i32
  }
  func.func @transform_2(%arg0: i32) -> (i32, i32) {
    %c0_i32 = arith.constant 0 : i32
    %c0_i32_0 = arith.constant 0 : i32
    %c0_i32_1 = arith.constant 0 : i32
    return %c0_i32, %c0_i32_0 : i32, i32
  }
  func.func @transform_3(%arg0: i32) -> (i32, i32, i32) {
    %c0_i32 = arith.constant 0 : i32
    %c0_i32_0 = arith.constant 0 : i32
    %c0_i32_1 = arith.constant 0 : i32
    %c0_i32_2 = arith.constant 0 : i32
    return %c0_i32, %c0_i32_0, %c0_i32_1 : i32, i32, i32
  }
  func.func @transform_4(%arg0: i32) -> (i32, i32, i32) {
    %c0_i32 = arith.constant 0 : i32
    %c0_i32_0 = arith.constant 0 : i32
    %c0_i32_1 = arith.constant 0 : i32
    %c0_i32_2 = arith.constant 0 : i32
    return %c0_i32, %c0_i32_0, %c0_i32_1 : i32, i32, i32
  }
  func.func @transform_5(%arg0: i32) -> (i32, i32, i32) {
    %c0_i32 = arith.constant 0 : i32
    %c0_i32_0 = arith.constant 0 : i32
    %c0_i32_1 = arith.constant 0 : i32
    %c0_i32_2 = arith.constant 0 : i32
    return %c0_i32, %c0_i32_0, %c0_i32_1 : i32, i32, i32
  }
  func.func @transform_6(%arg0: i32) -> (i32, i32, i32) {
    %c0_i32 = arith.constant 0 : i32
    %c0_i32_0 = arith.constant 0 : i32
    %c0_i32_1 = arith.constant 0 : i32
    %c0_i32_2 = arith.constant 0 : i32
    return %c0_i32, %c0_i32_0, %c0_i32_1 : i32, i32, i32
  }
  func.func @transform_7(%arg0: i32) -> (i32, i32) {
    %c0_i32 = arith.constant 0 : i32
    %c0_i32_0 = arith.constant 0 : i32
    %c0_i32_1 = arith.constant 0 : i32
    return %c0_i32, %c0_i32_0 : i32, i32
  }
  func.func @transform_8(%arg0: i32) -> (i32, i32) {
    %c0_i32 = arith.constant 0 : i32
    %c0_i32_0 = arith.constant 0 : i32
    %c0_i32_1 = arith.constant 0 : i32
    return %c0_i32, %c0_i32_0 : i32, i32
  }
  func.func @transform_9(%arg0: i32) -> (i32, i32) {
    %c0_i32 = arith.constant 0 : i32
    %c0_i32_0 = arith.constant 0 : i32
    %c0_i32_1 = arith.constant 0 : i32
    return %c0_i32, %c0_i32_0 : i32, i32
  }
  func.func @transform_10(%arg0: i32) -> (i32, i32) {
    %c0_i32 = arith.constant 0 : i32
    %c0_i32_0 = arith.constant 0 : i32
    %c0_i32_1 = arith.constant 0 : i32
    return %c0_i32, %c0_i32_0 : i32, i32
  }
  func.func @transform_11(%arg0: i32) -> (i32, i32) {
    %c0_i32 = arith.constant 0 : i32
    %c0_i32_0 = arith.constant 0 : i32
    %c0_i32_1 = arith.constant 0 : i32
    return %c0_i32, %c0_i32_0 : i32, i32
  }
  func.func @transform_12(%arg0: i32) -> (i32, i32, i32, i32) {
    %c0_i32 = arith.constant 0 : i32
    %c0_i32_0 = arith.constant 0 : i32
    %c0_i32_1 = arith.constant 0 : i32
    %c0_i32_2 = arith.constant 0 : i32
    return %arg0, %c0_i32, %c0_i32_0, %c0_i32_1 : i32, i32, i32, i32
  }
}

</mosaic_0001>

<bundles_post_ra>
// kernel: tpu_custom_call.1
= control target key start
LH: loop header
LB: loop body
LE: loop exit
PB: predicated region body
PF: predicated region fallthrough
CT: control target
= control target key end

     0   :  { %s2490_s0 = inlined_call_operand.vmem [shape: bf16[2,1,8,64], index: 0, kind: input, shape index: {}]   ;;  %s2491_s1 = inlined_call_operand.hbm [shape: bf16[2,1,16,64], index: 1, kind: input, shape index: {}]   ;;  %s2492_s2 = inlined_call_operand.vmem [shape: bf16[16,8], index: 2, kind: input, shape index: {}]   ;;  %s2493_s3 = inlined_call_operand.hbm [shape: bf16[2,64,64], index: 3, kind: input, shape index: {}]   ;;  %s2494_s4 = inlined_call_operand.hbm [shape: bf16[3,64,64], index: 4, kind: input, shape index: {}]   ;;  %s2495_s5 = inlined_call_operand.hbm [shape: bf16[3,64,64], index: 5, kind: input, shape index: {}]   ;;  %s2496_s6 = inlined_call_operand.hbm [shape: bf16[3,64,64], index: 6, kind: input, shape index: {}]   ;;  %s2497_s7 = inlined_call_operand.vmem [shape: f32[1,64], index: 7, kind: input, shape index: {}]   ;;  %s2498_s8 = inlined_call_operand.vmem [shape: f32[1,64], index: 8, kind: input, shape index: {}]   ;;  %s2499_s9 = inlined_call_operand.vmem [shape: f32[1,64], index: 9, kind: input, shape index: {}]   ;;  %s2500_s10 = inlined_call_operand.vmem [shape: f32[1,64], index: 10, kind: input, shape index: {}]   ;;  %s2501_s11 = inlined_call_operand.vmem [shape: f32[1,64], index: 11, kind: input, shape index: {}]   ;;  %s2502_s12 = inlined_call_operand.hbm [shape: f32[2,1,16,64], index: 12, kind: output, shape index: {}]  }
   0x1   :  { %2507 = sst [smem:[#allocation22_spill]] %s2493_s3 }
   0x2   :  { %2508 = sst [smem:[#allocation23_spill]] %s2494_s4 }
   0x3   :  { %2509 = sst [smem:[#allocation24_spill]] %s2495_s5 }
   0x4   :  { %2510 = sst [smem:[#allocation25_spill]] %s2496_s6 }
   0x5   :  { %17 = vsyncpa [#allocation7], 0 }
   0x6   :  { %19 = vsyncpa [#allocation7 + $0x1], 0 }
   0x7   :  { %20 = vsyncpa [#allocation10], 0 }
   0x8   :  { %21 = vsyncpa [#allocation13], 0 }
   0x9   :  { %22 = vsyncpa [#allocation8], 0 }
   0xa   :  { %24 = vsyncpa [#allocation8 + $0x1], 0  ;;  %s2207_s21 = smov 0   ;;  %s2209_s22 = smov 0  }
   0xb   :  { %s2211_s23 = smov 0   ;;  %s2213_s24 = smov 0  }
   0xc LB: > { %2511 = sst [smem:[#allocation20_spill]] %s2120_s21  ;;  %s2228_s25 = sadd.s32 4294967295, %s2132_s24   ;;  %s2132_s24 = sphi %s2213_s24, %s2539_s24   ;;  %s2128_s23 = sphi %s2211_s23, %s2538_s23   ;;  %s2124_s22 = sphi %s2209_s22, %s2537_s22   ;;  %s2120_s21 = sphi %s2207_s21, %s2536_s21  }
   0xd   : > { %s1510_s26 = sadd.s32 4294967294, %s2132_s24   ;;  %p76_p0 = scmp.ne.s32.totalorder %s2124_s22, %s2120_s21 }
   0xe   : > { %p77_p1 = scmp.eq.s32.totalorder %s2228_s25, 0  ;;  %p310_p2 = scmp.eq.s32.totalorder %s2228_s25, 1 }
   0xf   : > { %p316_p3 = scmp.eq.s32.totalorder %s1510_s26, 1  ;;  %p1511_p5 = scmp.ge.s32.totalorder %s2132_s24, 1 }
  0x10   : > { %p2237_p4 = por %p77_p1, %p76_p0  ;;  %p323_p7 = scmp.lt.s32.totalorder %s2132_s24, 3 }
  0x11   : > { %p2242_p6 = por %p316_p3, %p76_p0  ;;  %s2515_s3 = sld [smem:[#allocation22_spill]] }
  0x12   : > { %p2250_p8 = pnand %p1511_p5, %p323_p7  ;;  %s2134_s15 = smov [#allocation9]  }
  0x13   : > { %s2513_s28 = scalar_select %p2242_p6, 1, 0 }
  0x14   : > { %p1832_p9 = pneg %p2250_p8  ;;  %s339_s16 = sshll.u32 %s2134_s15, 4  ;;  %s340_s16 = int_to_ptr.vmem [resolvable:$true] %s339_s16 }
  0x15   : > { %2514 = sst [smem:[#allocation21_spill]] %s2513_s28  ;;  %s2505_s26 = smov 64  }
  0x16   : > { %p2258_p10 = pnand %p1832_p9, %p77_p1  ;;  %s2518_s5 = sld [smem:[#allocation24_spill]] }
  0x17   : > { %s337_s13 = sshll.u32 %s2515_s3, 4  ;;  %s2506_s29 = smov 4   ;;  %s338_s13 = int_to_ptr.hbm [resolvable:$true] %s337_s13 }
  0x18   : > { %1835 = dma.hbm_to_vmem [thread:$0]  (!%p2258_p10), %s338_s13, 1024, %s340_s16, [#allocation10], %s2505_s26, %s2505_s26, %s2506_s29  }
  0x19   : > { %s2137_s30 = smov [#allocation12]   ;;  %s2519_s4 = sld [smem:[#allocation23_spill]] }
  0x1a   : > { %s367_s15 = sshll.u32 %s2137_s30, 4  ;;  %s2520_s6 = sld [smem:[#allocation25_spill]]  ;;  %s368_s15 = int_to_ptr.vmem [resolvable:$true] %s367_s15 }
  0x1b   : > { %s2138_s19 = smov [#allocation11]   ;;  %s2139_s28 = smov [#allocation14]  }
  0x1c   : > { %s365_s20 = sshll.u32 %s2518_s5, 4  ;;  %s353_s3 = sshll.u32 %s2138_s19, 4  ;;  %s366_s20 = int_to_ptr.hbm [resolvable:$true] %s365_s20  ;;  %s354_s3 = int_to_ptr.vmem [resolvable:$true] %s353_s3 }
  0x1d   : > { %1841 = dma.hbm_to_vmem [thread:$0]  (!%p2258_p10), %s366_s20, 1536, %s368_s15, [#allocation13], %s2505_s26, %s2505_s26, %s2506_s29  }
  0x1e   : > { %s381_s20 = sshll.u32 %s2139_s28, 4  ;;  %s2293_s30 = sadd.s32 1, %s2132_s24   ;;  %s382_s20 = int_to_ptr.vmem [resolvable:$true] %s381_s20 }
  0x1f   : > { %s351_s21 = sshll.u32 %s2519_s4, 4  ;;  %s63_s15 = sadd.s32 1, %s2128_s23  ;;  %s352_s21 = int_to_ptr.hbm [resolvable:$true] %s351_s21 }
  0x20   : > { %s379_s18 = sshll.u32 %s2520_s6, 4  ;;  %s60_s13 = ssub.s32 %s2132_s24, %s2293_s30  ;;  %s380_s18 = int_to_ptr.hbm [resolvable:$true] %s379_s18 }
  0x21   : > { %1838 = dma.hbm_to_vmem [thread:$0]  (!%p2258_p10), %s352_s21, 1536, %s354_s3, [#allocation10], %s2505_s26, %s2505_s26, %s2506_s29  }
  0x22   : > { %1844 = dma.hbm_to_vmem [thread:$0]  (!%p2258_p10), %s380_s18, 1536, %s382_s20, [#allocation13], %s2505_s26, %s2505_s26, %s2506_s29  }
  0x23   : > { %p70_p12 = scmp.ne.s32.totalorder %s2128_s23, %s2124_s22  ;;  %p61_p13 = scmp.eq.s32.totalorder %s60_s13, 0 }
  0x24   : > { %p71_p0 = scmp.eq.s32.totalorder %s2132_s24, 0  ;;  %p1857_p5 = scmp.lt.s32.totalorder %s2132_s24, 2 }
  0x25   : > { %p2303_p3 = por %p310_p2, %p70_p12  ;;  %s417_s17 = sand.u32 1, %s2128_s23  }
  0x26   : > { %s2309_s16 = scalar_select %p61_p13, %s2128_s23, %s63_s15  }
  0x27   : > { %p72_p7 = por %p71_p0, %p70_p12  ;;  %s1517_s19 = sshll.u32 %s417_s17, 3 }
  0x28   : > { %s1757_s18 = sshll.u32 %s2132_s24, 3  ;;  %s421_s26 = scalar_lea.vmem [#allocation6], %s1517_s19 }
  0x29   : > { %s426_s20 = scalar_lea.hbm %s2491_s1, %s1757_s18  ;;  %s429_s29 = sshll.u32 %s421_s26, 4  ;;  %s430_s29 = int_to_ptr.vmem [resolvable:$true] %s429_s29 }
  0x2a   : > { %s427_s13 = sshll.u32 %s426_s20, 4  ;;  %p2316_p2 = pnand %p1857_p5, %p72_p7  ;;  %s428_s13 = int_to_ptr.hbm [resolvable:$true] %s427_s13 }
  0x2b   : > { %s418_s15 = scalar_lea.sflag [#allocation7], %s417_s17  ;;  %s2028_s5 = sshra.s32 %s428_s13, 4  ;;  %s2029_s5 = int_to_ptr.hbm [resolvable:$true] %s2028_s5 }
  0x2c   : > { %s2030_s6 = scalar_lea.hbm %s2029_s5, 8  ;;  %p2032_p10 = pneg %p2316_p2 }
  0x2d   : > { %p2031_p9 = scmp.ne.s32.totalorder %s2029_s5, %s2030_s6  ;;  %s2035_s26 = scalar_lea.hbm %s2491_s1, 16 }
  0x2e   : > { %p2036_p0 = scmp.lt.s32.totalorder %s2029_s5, %s2491_s1  ;;  %p2037_p5 = scmp.lt.s32.totalorder %s2035_s26, %s2030_s6 }
  0x2f   : > { %p2033_p12 = pnand %p2032_p10, %p2031_p9 }
  0x30   : > { %p2038_p7 = por %p2037_p5, %p2036_p0 }
  0x31   : > { %p2034_p13 = pneg %p2033_p12 }
  0x33   : > { %p2039_p11 = pnand %p2038_p7, %p2034_p13 }
  0x35   : > { %2042 = shalt.err (!%p2039_p11)
}
  0x36   : > { %s2523_s17 = smov 4   ;;  %s2524_s20 = smov 64  }
  0x37   : > { %1848 = dma.hbm_to_vmem [thread:$0]  (!%p2316_p2), %s428_s13, 128, %s430_s29, %s418_s15, %s2524_s20, %s2524_s20, %s2523_s17  }
  0x38   : > { %441 = sbr.rel (%p2250_p8) target bundleno = 718 (0x2ce), region = 68  ;;  %s2336_s18 = sand.u32 (!%p2250_p8), 1, %s2124_s22  }
  0x39   : > { %s1521_s5 = sshll.u32 (!%p2250_p8), %s2336_s18, 3  ;;  %s444_s6 = scalar_lea.sflag (!%p2250_p8), [#allocation7], %s2336_s18 }
  0x3a   : > { %s2340_s19 = scalar_lea.vmem (!%p2250_p8), [#allocation6], %s1521_s5 }
  0x3d   : > { %2103 = dma.done.wait (%p2237_p4), %s444_s6, 128  }
  0x3e   : > { %2105 = vsyncadd (%p2237_p4), %s444_s6, 4294967168 }
  0x3f   : > { %2107 = dma.done.wait (%p77_p1), [#allocation10], 2560  }
  0x40   : > { %2109 = vsyncadd (%p77_p1), [#allocation10], 4294964736 }
  0x41   : > { %2111 = dma.done.wait (%p77_p1), [#allocation13], 3072  }
  0x42   : > { %2113 = vsyncadd (%p77_p1), [#allocation13], 4294964224  ;;  %p513_p8 = scmp.lt.s32.totalorder %s2228_s25, 1  ;;  %vm590_vm0 = vcmask 1043456   ;;  %v1759_v2 = vld [vmem:[%s2492_s2] sm:$0xff]  ;;  %vm586_vm1 = vcmask 64512  }
  0x43   : > { %v1763_v3 = vld [vmem:[#allocation9 + $0x18] sm:$0xff]  ;;  %v1762_v4 = vld [vmem:[#allocation9 + $0x10] sm:$0xff]  ;;  %v1761_v5 = vld [vmem:[#allocation9 + $0x8] sm:$0xff]  ;;  %vm518_vm2 = vcmask 516096   ;;  %vm519_vm3 = vsmask.f32 256 }
  0x44   : > { %s514_s4 = scalar_select %p513_p8, %s2228_s25, 1  ;;  %731 = vmatpush.bf16.msra.mxu2 %v1763_v3  ;;  %vm2364_vm4 = vmand %vm518_vm2, %vm519_vm3  ;;  %v521_v7 = vld [vmem:[#allocation2 + $0x8] sm:$0x1]  ;;  %v1760_v9 = vld [vmem:[#allocation9] sm:$0xff]  ;;  %vm568_vm5 = vcmask 519168   ;;  %vm677_vm6 = vcmask 523264  }
  0x45   : > { %v522_v8 = vsel %vm2364_vm4, 0, %v521_v7  ;;  %v1768_v10 = vld [vmem:[#allocation9 + $0x38] sm:$0xff]  ;;  %v1767_v11 = vld [vmem:[#allocation9 + $0x30] sm:$0xff]  ;;  %v1766_v12 = vld [vmem:[#allocation9 + $0x28] sm:$0xff]  ;;  %vm640_vm7 = vsmask.f32 7424 }
  0x46   : > { %s1527_s14 = sshll.u32 %s514_s4, 2  ;;  %523 = vst [vmem:[#allocation2 + $0x8] sm:$0x1] %v522_v8  ;;  %685 = vmatpush.bf16.msra.mxu1 %v1768_v10  ;;  %v1765_v13 = vld [vmem:[#allocation9 + $0x20] sm:$0xff]  ;;  %v1776_v32 = vld [vmem:[#allocation12 + $0x38] sm:$0xff]  ;;  %v1775_v47 = vld [vmem:[#allocation12 + $0x30] sm:$0xff] }
  0x47   : > { %s516_s13 = scalar_lea.vmem %s2490_s0, %s1527_s14  ;;  %v524_v33 = vld [vmem:[#allocation3] sm:$0x1]  ;;  %vm527_vm8 = vsmask.f32 7938  ;;  %v529_v36 = vld [vmem:[#allocation3 + $0x8] sm:$0x1]  ;;  %830 = vmatpush.bf16.msra.mxu3 %v1776_v32 }
  0x48   : > { %v578_v0 = vld [vmem:[%s516_s13] sm:$0xf]  ;;  %732 = vmatpush.bf16.msra.mxu2 %v1762_v4  ;;  %v525_v34 = vsel %vm2364_vm4, 0, %v524_v33  ;;  %vm2378_vm9 = vmand %vm518_vm2, %vm527_vm8  ;;  %v538_v40 = vld [vmem:[#allocation5] sm:$0x1]  ;;  %vm1022_vm13 = vcmask 1046528  }
  0x49   : > { %v592_v1 = vsel %vm590_vm0, %v578_v0, 0  ;;  %v535_v37 = vld [vmem:[#allocation4 + $0x8] sm:$0x1]  ;;  %526 = vst [vmem:[#allocation3] sm:$0x1] %v525_v34  ;;  %v530_v38 = vsel %vm2378_vm9, 0, %v529_v36  ;;  %vm2393_vm10 = vmand %vm568_vm5, %vm527_vm8 }
  0x4a   : > { %601 = vmatpush.bf16.msra.mxu0 %v592_v1  ;;  %686 = vmatpush.bf16.msra.mxu1 %v1767_v11  ;;  %v536_v39 = vsel %vm2378_vm9, 0, %v535_v37  ;;  %531 = vst [vmem:[#allocation3 + $0x8] sm:$0x1] %v530_v38  ;;  %v539_v41 = vsel %vm2364_vm4, 0, %v538_v40  ;;  %v541_v42 = vld [vmem:[#allocation5 + $0x8] sm:$0x1] }
  0x4b   : > { %537 = vst [vmem:[#allocation4 + $0x8] sm:$0x1] %v536_v39  ;;  %v542_v43 = vsel %vm2378_vm9, 0, %v541_v42  ;;  %v544_v44 = vld [vmem:[%s2340_s19] sm:$0xf]  ;;  %831 = vmatpush.bf16.msra.mxu3 %v1775_v47  ;;  %v1774_v51 = vld [vmem:[#allocation12 + $0x28] sm:$0xff] }
  0x4c   : > { %733 = vmatpush.bf16.msra.mxu2 %v1761_v5  ;;  %540 = vst [vmem:[#allocation5] sm:$0x1] %v539_v41  ;;  %v549_v45 = vshrl.u32 %v544_v44, 16  ;;  %v552_v46 = vshll.u32 %v544_v44, 16  ;;  %v1772_v49 = vld [vmem:[#allocation11 + $0x38] sm:$0xff]  ;;  %v1771_v55 = vld [vmem:[#allocation11 + $0x30] sm:$0xff] }
  0x4d   : > { %1532 = vmatmul.msk.bf16.vlgmr.msra.gmra.mxu0 %vm586_vm1, %v1759_v2  ;;  %v622_v16 = vld [vmem:[#allocation2 + $0x8] sm:$0x1]  ;;  %543 = vst [vmem:[#allocation5 + $0x8] sm:$0x1] %v542_v43  ;;  %v1773_v56 = vld [vmem:[#allocation12 + $0x20] sm:$0xff]  ;;  %v1786_v60 = vld [vmem:[#allocation12 + $0x18] sm:$0xff] }
  0x4e   : > { %687 = vmatpush.bf16.msra.mxu1 %v1766_v12  ;;  %v637_v19 = vunpack.c.l.b16 %v622_v16  ;;  %v551_v48 = vrot.slane %v549_v45, 7  ;;  %876 = vmatpush.bf16.msrb.mxu0 %v1772_v49  ;;  %v545_v57 = vld [vmem:[%s2340_s19 + $0x4] sm:$0xf]  ;;  %v1770_v59 = vld [vmem:[#allocation11 + $0x28] sm:$0xff]  ;;  %vm546_vm11 = vsmask.f32 4368 }
  0x4f   : > { %832 = vmatpush.bf16.msra.mxu3 %v1774_v51  ;;  %v557_v58 = vshrl.u32 %v545_v57, 16  ;;  %v1758_v61 = vld [vmem:[%s2340_s19] sm:$0xff]  ;;  %v560_v63 = vshll.u32 %v545_v57, 16  ;;  %vm2403_vm12 = vmor %vm519_vm3, %vm546_vm11  ;;  %v1769_v5 = vld [vmem:[#allocation11 + $0x20] sm:$0xff]  ;;  %s1526_s14 = sshll.u32 %s2336_s18, 4  ;;  %s1811_s13 = sshll.u32 %s2228_s25, 4 }
  0x50   : > { %734 = vmatpush.bf16.msra.mxu2 %v1760_v9  ;;  %v639_v23 = vpack.c.b16 %v637_v19, %v637_v19  ;;  %v554_v50 = vor.u32 %v552_v46, %v551_v48  ;;  %v555_v0 = vrot.slane %v551_v48, 4  ;;  %v1785_v7 = vld [vmem:[#allocation12 + $0x10] sm:$0xff]  ;;  %v1781_v8 = vld [vmem:[#allocation11 + $0x18] sm:$0xff]  ;;  %v1784_v11 = vld [vmem:[#allocation12 + $0x8] sm:$0xff]  ;;  %s1383_s3 = scalar_lea.hbm %s2502_s12, %s1811_s13  ;;  %s512_s28 = scalar_lea.vmem [#allocation15], %s1526_s14 }
  0x51   : > { %v559_v62 = vrot.slane %v557_v58, 7  ;;  %v1780_v12 = vld [vmem:[#allocation11 + $0x10] sm:$0xff]  ;;  %v1779_v16 = vld [vmem:[#allocation11 + $0x8] sm:$0xff]  ;;  %s1384_s17 = sshll.u32 %s512_s28, 4  ;;  %s1386_s20 = sshll.u32 %s1383_s3, 4  ;;  %s1385_s17 = int_to_ptr.vmem [resolvable:$true] %s1384_s17  ;;  %s1387_s20 = int_to_ptr.hbm [resolvable:$true] %s1386_s20 }
  0x52   : > { %688 = vmatpush.bf16.msra.mxu1 %v1765_v13  ;;  %v649_v25 = vshll.u32 %v639_v23, 16  ;;  %877 = vmatpush.bf16.msrb.mxu0 %v1771_v55  ;;  %v1791_v13 = vld [vmem:[#allocation11 + $0x58] sm:$0xff]  ;;  %v769_v37 = vld [vmem:[#allocation3] sm:$0xf]  ;;  %v773_v49 = vld [vmem:[#allocation3 + $0x8] sm:$0x1] }
  0x53   : > { %v570_v53 = vld [vmem:[#allocation5] sm:$0xf]  ;;  %833 = vmatpush.bf16.msra.mxu3 %v1773_v56  ;;  %v562_v3 = vor.u32 %v560_v63, %v559_v62  ;;  %v564_v4 = vrot.slane %v559_v62, 4  ;;  %s1372_s25 = scalar_lea.sflag [#allocation8], %s2336_s18  ;;  %s2072_s5 = sshra.s32 %s1387_s20, 4  ;;  %s2073_s5 = int_to_ptr.hbm [resolvable:$true] %s2072_s5 }
  0x54   : > { %v651_v29 = vrot.slane %v649_v25, 1  ;;  %v571_v54 = vsel %vm2393_vm10, %v554_v50, %v570_v53  ;;  %990 = vmatpush.bf16.msrb.mxu2 %v1786_v60  ;;  %v575_v1 = vld [vmem:[#allocation5 + $0x8] sm:$0x1]  ;;  %v1788_v25 = vld [vmem:[#allocation11 + $0x40] sm:$0xff]  ;;  %s2074_s6 = scalar_lea.hbm %s2073_s5, 16  ;;  %s2078_s14 = scalar_lea.hbm %s2502_s12, 32 }
  0x55   : > { %572 = vst [vmem:[#allocation5] sm:$0xf] %v571_v54  ;;  %v563_v9 = vsel %vm2403_vm12, %v555_v0, %v562_v3  ;;  %v576_v10 = vsel %vm2364_vm4, %v564_v4, %v575_v1  ;;  %p2075_p1 = scmp.ne.s32.totalorder %s2073_s5, %s2074_s6  ;;  %p2079_p2 = scmp.lt.s32.totalorder %s2073_s5, %s2502_s12 }
  0x56   : > { %878 = vmatpush.bf16.msrb.mxu0 %v1770_v59  ;;  %1591 = vmatmul.msk.bf16.vlgmr.msra.gmra.mxu3 %vm677_vm6, %v1758_v61  ;;  %574 = vst.msk [vmem:[#allocation5 + $0x4] sm:$0xf] %vm568_vm5, %v563_v9  ;;  %p2080_p9 = scmp.lt.s32.totalorder %s2078_s14, %s2074_s6 }
  0x57   : > { %932 = vmatpush.bf16.msrb.mxu1 %v1781_v8  ;;  %577 = vst [vmem:[#allocation5 + $0x8] sm:$0x1] %v576_v10  ;;  %1057 = vmatpush.bf16.msrb.mxu3 %v1791_v13  ;;  %p2076_p4 = pnand %p2075_p1, %p2303_p3 }
  0x58   : > { %991 = vmatpush.bf16.msrb.mxu2 %v1785_v7  ;;  %p2081_p10 = por %p2080_p9, %p2079_p2 }
  0x59   : > { %p2077_p11 = pneg %p2076_p4 }
  0x5a   : > { %879 = vmatpush.bf16.msrb.mxu0 %v1769_v5 }
  0x5b   : > { %933 = vmatpush.bf16.msrb.mxu1 %v1780_v12  ;;  %v532_v12 = vld [vmem:[#allocation4] sm:$0x1]  ;;  %p2082_p12 = pnand %p2081_p10, %p2077_p11 }
  0x5c   : > { %992 = vmatpush.bf16.msrb.mxu2 %v1784_v11  ;;  %v1674_v57 = vld [vmem:[#allocation5] sm:$0xe]  ;;  %v533_v13 = vsel %vm2364_vm4, 0, %v532_v12 }
  0x5d   : > { %v1782_v19 = vld [vmem:[#allocation5] sm:$0xff]  ;;  %534 = vst [vmem:[#allocation4] sm:$0x1] %v533_v13 }
  0x5e   : > { %v1071_v48 = vld [vmem:[#allocation5 + $0x8] sm:$0x1]  ;;  %v1792_v58 = vld [vmem:[#allocation5] sm:$0xf0] }
  0x5f   : > { %934 = vmatpush.bf16.msrb.mxu1 %v1779_v16  ;;  %v1086_v54 = vunpack.c.l.b16 %v1071_v48  ;;  %v1675_v59 = vor.u32 %v1792_v58, %v1674_v57 }
  0x61   : > { %v1088_v60 = vpack.c.b16 %v1086_v54, %v1086_v54  ;;  %v1089_v61 = vrot.slane %v1675_v59, 1 }
  0x63   : > { %v1090_v62 = vrot.slane %v1088_v60, 1 }
  0x64   : > { %v1165_v57 = vld [vmem:[#allocation4] sm:$0xf] }
  0x65   : > { %v1091_v7 = vsel %vm1022_vm13, %v1089_v61, %v1090_v62 }
  0xca   : > { %v603_v14 = vpop.f32.mrf.mxu0 }
  0xcb   : > { %v608_v15 = vpack.c.bf16 %v603_v14, %v603_v14  ;;  %v1796_v14 = vld [vmem:[#allocation12 + $0x58] sm:$0xff] }
  0xcc   : > { %1123 = vmatpush.bf16.msra.mxu0 %v1796_v14  ;;  %v1800_v14 = vld [vmem:[#allocation14 + $0x38] sm:$0xff] }
  0xcd   : > { %610 = vst.msk [vmem:[#allocation2] sm:$0xf] %vm568_vm5, %v608_v15  ;;  %v697_v20 = vunpack.c.l.b16 %v608_v15  ;;  %v1783_v15 = vld [vmem:[#allocation12] sm:$0xff] }
  0xce   : > { %993 = vmatpush.bf16.msrb.mxu2 %v1783_v15  ;;  %v1799_v15 = vld [vmem:[#allocation14 + $0x30] sm:$0xff] }
  0xd2   : > { %v605_v17 = vpop.f32.mrf.mxu0 }
  0xd3   : > { %v609_v18 = vpack.c.bf16 %v605_v17, %v605_v17  ;;  %v1790_v17 = vld [vmem:[#allocation11 + $0x50] sm:$0xff] }
  0xd4   : > { %1058 = vmatpush.bf16.msrb.mxu3 %v1790_v17 }
  0xd5   : > { %611 = vst.msk [vmem:[#allocation2 + $0x4] sm:$0xf] %vm568_vm5, %v609_v18  ;;  %v698_v21 = vunpack.c.l.b16 %v609_v18  ;;  %v1795_v18 = vld [vmem:[#allocation12 + $0x50] sm:$0xff] }
  0xd6   : > { %1124 = vmatpush.bf16.msra.mxu0 %v1795_v18  ;;  %v1798_v18 = vld [vmem:[#allocation14 + $0x28] sm:$0xff] }
  0xd7   : > { %v699_v22 = vpack.c.b16 %v698_v21, %v697_v20  ;;  %v1778_v20 = vld [vmem:[#allocation11] sm:$0xff]  ;;  %v1789_v21 = vld [vmem:[#allocation11 + $0x48] sm:$0xff] }
  0xd8   : > { %935 = vmatpush.bf16.msrb.mxu1 %v1778_v20  ;;  %1059 = vmatpush.bf16.msrb.mxu3 %v1789_v21  ;;  %v1805_v20 = vld [vmem:[#allocation14 + $0x18] sm:$0xff] }
  0xd9   : > { %1570 = vmatmul.msk.bf16.vlgmr.msra.gmra.mxu2 %vm677_vm6, %v699_v22  ;;  %v1794_v22 = vld [vmem:[#allocation12 + $0x48] sm:$0xff]  ;;  %v835_v17 = vpop.f32.mrf.mxu3 }
  0xda   : > { %1125 = vmatpush.bf16.msra.mxu0 %v1794_v22  ;;  %1273 = vmatpush.bf16.msra.mxu2 %v1800_v14 }
  0xdc   : > { %v1764_v24 = vld [vmem:[#allocation2] sm:$0xff]  ;;  %1060 = vmatpush.bf16.msrb.mxu3 %v1788_v25 }
  0xdd   : > { %v644_v26 = vshll.u32 %v1764_v24, 16  ;;  %v642_v27 = vshrl.u32 %v1764_v24, 16  ;;  %v1903_v24 = vld [vmem:[%s2497_s7] ss:$0 sm:$0xff] }
  0xde   : > { %1274 = vmatpush.bf16.msra.mxu2 %v1799_v15 }
  0xdf   : > { %v646_v28 = vrot.slane %v644_v26, 1  ;;  %v1793_v26 = vld [vmem:[#allocation12 + $0x40] sm:$0xff] }
  0xe0   : > { %1126 = vmatpush.bf16.msra.mxu0 %v1793_v26  ;;  %v1810_v26 = vld [vmem:[#allocation14 + $0x58] sm:$0xff] }
  0xe1   : > { %v647_v30 = vor.u32 %v646_v28, %v642_v27  ;;  %1337 = vmatpush.bf16.msra.mxu3 %v1810_v26  ;;  %v1906_v26 = vld [vmem:[%s2500_s10] ss:$0 sm:$0xff] }
  0xe2   : > { %1275 = vmatpush.bf16.msra.mxu2 %v1798_v18 }
  0xe3   : > { %v652_v31 = vsel %vm640_vm7, %v647_v30, %v651_v29 }
  0xe4   : > { %1553 = vmatmul.msk.bf16.vlgmr.msra.gmra.mxu1 %vm677_vm6, %v652_v31 }
  0xe5   : > { %1227 = vmatpush.bf16.msra.mxu1 %v1805_v20 }
  0xe9   : > { %1650 = vmatmul.msk.bf16.vlgmr.msrb.gmra.mxu2 %vm677_vm6, %v1782_v19  ;;  %v1797_v19 = vld [vmem:[#allocation14 + $0x20] sm:$0xff] }
  0xea   : > { %1276 = vmatpush.bf16.msra.mxu2 %v1797_v19 }
 0x15c   : > { %v736_v23 = vpop.f32.mrf.mxu2 }
 0x161   : > { %v690_v27 = vpop.f32.mrf.mxu1 }
 0x162   : > { %v737_v28 = vadd.f32 %v736_v23, %v690_v27  ;;  %v1804_v23 = vld [vmem:[#allocation14 + $0x10] sm:$0xff] }
 0x163   : > { %1228 = vmatpush.bf16.msra.mxu1 %v1804_v23 }
 0x164   : > { %v745_v29 = vadd.f32 %v1903_v24, %v737_v28  ;;  %v738_v32 = vpop.f32.mrf.mxu2 }
 0x166   : > { %v747_v30 = vpack.c.bf16 %v745_v29, %v745_v29  ;;  %v1803_v29 = vld [vmem:[#allocation14 + $0x8] sm:$0xff] }
 0x167   : > { %1229 = vmatpush.bf16.msra.mxu1 %v1803_v29  ;;  %v1907_v29 = vld [vmem:[%s2501_s11] ss:$0 sm:$0xff] }
 0x168   : > { %v750_v31 = vshrl.u32 %v747_v30, 16  ;;  %v753_v35 = vshll.u32 %v747_v30, 16  ;;  %v842_v42 = vunpack.c.l.b16 %v747_v30  ;;  %v1809_v30 = vld [vmem:[#allocation14 + $0x50] sm:$0xff] }
 0x169   : > { %v692_v33 = vpop.f32.mrf.mxu1  ;;  %1338 = vmatpush.bf16.msra.mxu3 %v1809_v30 }
 0x16a   : > { %v752_v34 = vrot.slane %v750_v31, 7  ;;  %v739_v36 = vadd.f32 %v738_v32, %v692_v33  ;;  %v1802_v31 = vld [vmem:[#allocation14] sm:$0xff] }
 0x16b   : > { %1230 = vmatpush.bf16.msra.mxu1 %v1802_v31 }
 0x16c   : > { %v755_v38 = vor.u32 %v753_v35, %v752_v34  ;;  %v746_v39 = vadd.f32 %v1903_v24, %v739_v36  ;;  %v756_v50 = vrot.slane %v752_v34, 4  ;;  %v837_v24 = vpop.f32.mrf.mxu3  ;;  %v995_v27 = vpop.f32.mrf.mxu2  ;;  %v1808_v34 = vld [vmem:[#allocation14 + $0x48] sm:$0xff] }
 0x16d   : > { %1339 = vmatpush.bf16.msra.mxu3 %v1808_v34 }
 0x16e   : > { %v770_v40 = vsel %vm2393_vm10, %v755_v38, %v769_v37  ;;  %v748_v41 = vpack.c.bf16 %v746_v39, %v746_v39  ;;  %v1904_v39 = vld [vmem:[%s2498_s8] ss:$0 sm:$0xff] }
 0x16f   : > { %771 = vst [vmem:[#allocation3] sm:$0xf] %v770_v40 }
 0x170   : > { %v758_v43 = vshrl.u32 %v748_v41, 16  ;;  %v843_v44 = vunpack.c.l.b16 %v748_v41  ;;  %v761_v46 = vshll.u32 %v748_v41, 16 }
 0x172   : > { %v760_v45 = vrot.slane %v758_v43, 7  ;;  %v844_v47 = vpack.c.b16 %v843_v44, %v842_v42  ;;  %v1807_v42 = vld [vmem:[#allocation14 + $0x40] sm:$0xff] }
 0x173   : > { %1340 = vmatpush.bf16.msra.mxu3 %v1807_v42 }
 0x174   : > { %v763_v51 = vor.u32 %v761_v46, %v760_v45  ;;  %v765_v53 = vrot.slane %v760_v45, 4  ;;  %1608 = vmatmul.msk.bf16.vlgmr.msrb.gmra.mxu0 %vm677_vm6, %v844_v47  ;;  %v997_v43 = vpop.f32.mrf.mxu2 }
 0x176   : > { %v764_v55 = vsel %vm2403_vm12, %v756_v50, %v763_v51  ;;  %v774_v56 = vsel %vm2364_vm4, %v765_v53, %v773_v49  ;;  %v1653_v1 = vld [vmem:[#allocation3] sm:$0xe] }
 0x177   : > { %772 = vst.msk [vmem:[#allocation3 + $0x4] sm:$0xf] %vm568_vm5, %v764_v55 }
 0x178   : > { %775 = vst [vmem:[#allocation3 + $0x8] sm:$0x1] %v774_v56 }
 0x17e   : > { %v1777_v63 = vld [vmem:[#allocation3] sm:$0xff] }
 0x17f   : > { %v1787_v0 = vld [vmem:[#allocation3] sm:$0xf0]  ;;  %v1004_v3 = vld [vmem:[#allocation3 + $0x8] sm:$0x1]  ;;  %1629 = vmatmul.msk.bf16.vlgmr.msrb.gmra.mxu1 %vm677_vm6, %v1777_v63 }
 0x180   : > { %v1019_v4 = vunpack.c.l.b16 %v1004_v3  ;;  %v1654_v5 = vor.u32 %v1787_v0, %v1653_v1 }
 0x182   : > { %v1021_v8 = vpack.c.b16 %v1019_v4, %v1019_v4  ;;  %v1023_v9 = vrot.slane %v1654_v5, 1  ;;  %v1169_v5 = vld [vmem:[#allocation4 + $0x8] sm:$0x1] }
 0x184   : > { %v1024_v10 = vrot.slane %v1021_v8, 1  ;;  %1692 = vmatmul.msk.bf16.vlgmr.msra.gmra.mxu0 %vm677_vm6, %v1091_v7 }
 0x186   : > { %v1025_v11 = vsel %vm1022_vm13, %v1023_v9, %v1024_v10 }
 0x187   : > { %1671 = vmatmul.msk.bf16.vlgmr.msrb.gmra.mxu3 %vm677_vm6, %v1025_v11 }
 0x1f1   : > { %v881_v16 = vpop.f32.mrf.mxu0 }
 0x1f2   : > { %v882_v25 = vadd.f32 %v881_v16, %v835_v17 }
 0x1f9   : > { %v883_v22 = vpop.f32.mrf.mxu0 }
 0x1fa   : > { %v884_v37 = vadd.f32 %v883_v22, %v837_v24  ;;  %v1905_v22 = vld [vmem:[%s2499_s9] ss:$0 sm:$0xff] }
 0x1fc   : > { %v937_v21 = vpop.f32.mrf.mxu1 }
 0x1fd   : > { %v942_v28 = vadd.f32 %v937_v21, %v882_v25 }
 0x1ff   : > { %v1000_v32 = vadd.f32 %v995_v27, %v942_v28 }
 0x201   : > { %v1128_v33 = vpop.f32.mrf.mxu0 }
 0x204   : > { %v939_v35 = vpop.f32.mrf.mxu1 }
 0x205   : > { %v943_v40 = vadd.f32 %v939_v35, %v884_v37 }
 0x207   : > { %v1001_v45 = vadd.f32 %v997_v43, %v943_v40 }
 0x209   : > { %v1130_v50 = vpop.f32.mrf.mxu0 }
 0x20a   : > { %v1062_v36 = vpop.f32.mrf.mxu3 }
 0x20b   : > { %v1067_v38 = vadd.f32 %v1062_v36, %v1000_v32 }
 0x20d   : > { %v1133_v41 = vadd.f32 %v1128_v33, %v1067_v38 }
 0x20f   : > { %v1139_v44 = vadd.f32 %v1904_v39, %v1133_v41 }
 0x211   : > { %v1141_v46 = vmax.f32 %v1139_v44, 0.0 }
 0x212   : > { %v1064_v47 = vpop.f32.mrf.mxu3 }
 0x213   : > { %v1143_v48 = vpack.c.bf16 %v1141_v46, %v1141_v46  ;;  %v1068_v49 = vadd.f32 %v1064_v47, %v1001_v45 }
 0x215   : > { %v1146_v51 = vshrl.u32 %v1143_v48, 16  ;;  %v1134_v53 = vadd.f32 %v1130_v50, %v1068_v49  ;;  %v1149_v55 = vshll.u32 %v1143_v48, 16  ;;  %v1239_v62 = vunpack.c.l.b16 %v1143_v48 }
 0x217   : > { %v1148_v54 = vrot.slane %v1146_v51, 7  ;;  %v1140_v56 = vadd.f32 %v1904_v39, %v1134_v53 }
 0x219   : > { %v1151_v58 = vor.u32 %v1149_v55, %v1148_v54  ;;  %v1142_v59 = vmax.f32 %v1140_v56, 0.0  ;;  %v1152_v7 = vrot.slane %v1148_v54, 4 }
 0x21b   : > { %v1166_v60 = vsel %vm2393_vm10, %v1151_v58, %v1165_v57  ;;  %v1144_v61 = vpack.c.bf16 %v1142_v59, %v1142_v59 }
 0x21c   : > { %1167 = vst [vmem:[#allocation4] sm:$0xf] %v1166_v60 }
 0x21d   : > { %v1154_v63 = vshrl.u32 %v1144_v61, 16  ;;  %v1240_v0 = vunpack.c.l.b16 %v1144_v61  ;;  %v1157_v3 = vshll.u32 %v1144_v61, 16 }
 0x21f   : > { %v1156_v1 = vrot.slane %v1154_v63, 7  ;;  %v1241_v4 = vpack.c.b16 %v1240_v0, %v1239_v62 }
 0x221   : > { %v1159_v8 = vor.u32 %v1157_v3, %v1156_v1  ;;  %v1161_v9 = vrot.slane %v1156_v1, 4  ;;  %1730 = vmatmul.msk.bf16.vlgmr.msra.gmra.mxu2 %vm677_vm6, %v1241_v4 }
 0x223   : > { %v1160_v10 = vsel %vm2403_vm12, %v1152_v7, %v1159_v8  ;;  %v1170_v52 = vsel %vm2364_vm4, %v1161_v9, %v1169_v5  ;;  %v1733_v13 = vld [vmem:[#allocation4] sm:$0xe] }
 0x224   : > { %1168 = vst.msk [vmem:[#allocation4 + $0x4] sm:$0xf] %vm568_vm5, %v1160_v10 }
 0x225   : > { %1171 = vst [vmem:[#allocation4 + $0x8] sm:$0x1] %v1170_v52 }
 0x22b   : > { %v1801_v11 = vld [vmem:[#allocation4] sm:$0xff] }
 0x22c   : > { %v1806_v12 = vld [vmem:[#allocation4] sm:$0xf0]  ;;  %v1285_v14 = vld [vmem:[#allocation4 + $0x8] sm:$0x1]  ;;  %1713 = vmatmul.msk.bf16.vlgmr.msra.gmra.mxu1 %vm677_vm6, %v1801_v11 }
 0x22d   : > { %v1300_v15 = vunpack.c.l.b16 %v1285_v14  ;;  %v1734_v16 = vor.u32 %v1806_v12, %v1733_v13 }
 0x22f   : > { %v1302_v17 = vpack.c.b16 %v1300_v15, %v1300_v15  ;;  %v1303_v18 = vrot.slane %v1734_v16, 1 }
 0x231   : > { %v1304_v19 = vrot.slane %v1302_v17, 1 }
 0x233   : > { %v1305_v2 = vsel %vm1022_vm13, %v1303_v18, %v1304_v19 }
 0x234   : > { %1751 = vmatmul.msk.bf16.vlgmr.msra.gmra.mxu3 %vm677_vm6, %v1305_v2 }
 0x2a4   : > { %v1278_v20 = vpop.f32.mrf.mxu2 }
 0x2a9   : > { %v1232_v6 = vpop.f32.mrf.mxu1 }
 0x2aa   : > { %v1279_v21 = vadd.f32 %v1278_v20, %v1232_v6 }
 0x2ac   : > { %v1280_v30 = vpop.f32.mrf.mxu2 }
 0x2b1   : > { %v1234_v27 = vpop.f32.mrf.mxu1 }
 0x2b2   : > { %v1281_v31 = vadd.f32 %v1280_v30, %v1234_v27 }
 0x2b7   : > { %v1342_v23 = vpop.f32.mrf.mxu3 }
 0x2b8   : > { %v1347_v24 = vadd.f32 %v1342_v23, %v1279_v21 }
 0x2ba   : > { %v1353_v25 = vadd.f32 %v1905_v22, %v1347_v24 }
 0x2bc   : > { %v1355_v28 = vmax.f32 %v1353_v25, 0.0 }
 0x2be   : > { %v1361_v32 = vmul.f32 %v1906_v26, %v1355_v28 }
 0x2bf   : > { %v1344_v33 = vpop.f32.mrf.mxu3 }
 0x2c0   : > { %v1367_v34 = vadd.f32 %v1907_v29, %v1361_v32  ;;  %v1348_v35 = vadd.f32 %v1344_v33, %v1281_v31 }
 0x2c2   : > { %1369 = vst.msk [vmem:[%s512_s28] sm:$0xff] %vm677_vm6, %v1367_v34  ;;  %v1354_v36 = vadd.f32 %v1905_v22, %v1348_v35 }
 0x2c4   : > { %v1356_v37 = vmax.f32 %v1354_v36, 0.0 }
 0x2c6   : > { %v1362_v38 = vmul.f32 %v1906_v26, %v1356_v37 }
 0x2c8   : > { %v1368_v39 = vadd.f32 %v1907_v29, %v1362_v38 }
 0x2ca   : > { %1370 = vst.msk [vmem:[%s512_s28 + $0x8] sm:$0xff] %vm677_vm6, %v1368_v39 }
 0x2cb   : > { %2085 = shalt.err (!%p2082_p12)
}
 0x2cc   : > { %s2140_s18 = smov 128   ;;  %s2141_s13 = smov 8  }
 0x2cd   : > { %1830 = dma.vmem_to_hbm [thread:$0]  (%p2303_p3), %s1385_s17, 256, %s1387_s20, %s1372_s25, %s2140_s18, %s2140_s18, %s2141_s13  }
 0x2ce PF: > { %s2533_s15 = sld [smem:[#allocation20_spill]]  ;;  %p2535_p13 = scmp.ge.s32.totalorder %s2132_s24, 2 }
 0x2d0   : > { %p1850_p0 = pnand %p2535_p13, %p2242_p6 }
 0x2d2   : > { %p1851_p5 = pneg %p1850_p0 }
 0x2d4   : > { %s1401_s3 = sand.u32 1, %s2533_s15  }
 0x2d5   : > { %s1402_s28 = scalar_lea.sflag [#allocation8], %s1401_s3 }
 0x2d6   : > { %2115 = dma.done.wait (%p1851_p5), %s1402_s28, 256  }
 0x2d7   : > { %2117 = vsyncadd (%p1851_p5), %s1402_s28, 4294967040  ;;  %p27_p7 = scmp.ge.s32.totalorder %s2293_s30, 4   ;;  %s2536_s21 = smov %s2124_s22 }
 0x2d8   : > { %s2537_s22 = smov %s2128_s23  ;;  %s2538_s23 = smov %s2309_s16 }
 0x2d9   : > { %s2539_s24 = smov %s2293_s30  ;;  %29 = sbr.rel (!%p27_p7) target bundleno = 12 (0xc), region = 139 }
 0x2de   :  { %1408 = vsyncpa [#allocation7], 1 }
 0x2df   :  { %1410 = vsyncpa [#allocation7 + $0x1], 1 }
 0x2e0   :  { %1411 = vsyncpa [#allocation10], 1 }
 0x2e1   :  { %1412 = vsyncpa [#allocation13], 1 }
 0x2e2   :  { %1413 = vsyncpa [#allocation8], 1 }
 0x2e3   :  { %1415 = vsyncpa [#allocation8 + $0x1], 1 }

// kernel: tpu_custom_call.1
= control target key start
LH: loop header
LB: loop body
LE: loop exit
PB: predicated region body
PF: predicated region fallthrough
CT: control target
= control target key end

     0   :  { %s2490_s0 = inlined_call_operand.vmem [shape: bf16[2,1,8,64], index: 0, kind: input, shape index: {}]   ;;  %s2491_s1 = inlined_call_operand.hbm [shape: bf16[2,1,16,64], index: 1, kind: input, shape index: {}]   ;;  %s2492_s2 = inlined_call_operand.vmem [shape: bf16[16,8], index: 2, kind: input, shape index: {}]   ;;  %s2493_s3 = inlined_call_operand.hbm [shape: bf16[2,64,64], index: 3, kind: input, shape index: {}]   ;;  %s2494_s4 = inlined_call_operand.hbm [shape: bf16[3,64,64], index: 4, kind: input, shape index: {}]   ;;  %s2495_s5 = inlined_call_operand.hbm [shape: bf16[3,64,64], index: 5, kind: input, shape index: {}]   ;;  %s2496_s6 = inlined_call_operand.hbm [shape: bf16[3,64,64], index: 6, kind: input, shape index: {}]   ;;  %s2497_s7 = inlined_call_operand.vmem [shape: f32[1,64], index: 7, kind: input, shape index: {}]   ;;  %s2498_s8 = inlined_call_operand.vmem [shape: f32[1,64], index: 8, kind: input, shape index: {}]   ;;  %s2499_s9 = inlined_call_operand.vmem [shape: f32[1,64], index: 9, kind: input, shape index: {}]   ;;  %s2500_s10 = inlined_call_operand.vmem [shape: f32[1,64], index: 10, kind: input, shape index: {}]   ;;  %s2501_s11 = inlined_call_operand.vmem [shape: f32[1,64], index: 11, kind: input, shape index: {}]   ;;  %s2502_s12 = inlined_call_operand.hbm [shape: f32[2,1,16,64], index: 12, kind: output, shape index: {}]  }
   0x1   :  { %2507 = sst [smem:[#allocation22_spill]] %s2493_s3 }
   0x2   :  { %2508 = sst [smem:[#allocation23_spill]] %s2494_s4 }
   0x3   :  { %2509 = sst [smem:[#allocation24_spill]] %s2495_s5 }
   0x4   :  { %2510 = sst [smem:[#allocation25_spill]] %s2496_s6 }
   0x5   :  { %17 = vsyncpa [#allocation7], 0 }
   0x6   :  { %19 = vsyncpa [#allocation7 + $0x1], 0 }
   0x7   :  { %20 = vsyncpa [#allocation10], 0 }
   0x8   :  { %21 = vsyncpa [#allocation13], 0 }
   0x9   :  { %22 = vsyncpa [#allocation8], 0 }
   0xa   :  { %24 = vsyncpa [#allocation8 + $0x1], 0  ;;  %s2207_s21 = smov 0   ;;  %s2209_s22 = smov 0  }
   0xb   :  { %s2211_s23 = smov 0   ;;  %s2213_s24 = smov 0  }
   0xc LB: > { %2511 = sst [smem:[#allocation20_spill]] %s2120_s21  ;;  %s2228_s25 = sadd.s32 4294967295, %s2132_s24   ;;  %s2132_s24 = sphi %s2213_s24, %s2539_s24   ;;  %s2128_s23 = sphi %s2211_s23, %s2538_s23   ;;  %s2124_s22 = sphi %s2209_s22, %s2537_s22   ;;  %s2120_s21 = sphi %s2207_s21, %s2536_s21  }
   0xd   : > { %s1510_s26 = sadd.s32 4294967294, %s2132_s24   ;;  %p76_p0 = scmp.ne.s32.totalorder %s2124_s22, %s2120_s21 }
   0xe   : > { %p77_p1 = scmp.eq.s32.totalorder %s2228_s25, 0  ;;  %p310_p2 = scmp.eq.s32.totalorder %s2228_s25, 1 }
   0xf   : > { %p316_p3 = scmp.eq.s32.totalorder %s1510_s26, 1  ;;  %p1511_p5 = scmp.ge.s32.totalorder %s2132_s24, 1 }
  0x10   : > { %p2237_p4 = por %p77_p1, %p76_p0  ;;  %p323_p7 = scmp.lt.s32.totalorder %s2132_s24, 3 }
  0x11   : > { %p2242_p6 = por %p316_p3, %p76_p0  ;;  %s2515_s3 = sld [smem:[#allocation22_spill]] }
  0x12   : > { %p2250_p8 = pnand %p1511_p5, %p323_p7  ;;  %s2134_s15 = smov [#allocation9]  }
  0x13   : > { %s2513_s28 = scalar_select %p2242_p6, 1, 0 }
  0x14   : > { %p1832_p9 = pneg %p2250_p8  ;;  %s339_s16 = sshll.u32 %s2134_s15, 4  ;;  %s340_s16 = int_to_ptr.vmem [resolvable:$true] %s339_s16 }
  0x15   : > { %2514 = sst [smem:[#allocation21_spill]] %s2513_s28  ;;  %s2505_s26 = smov 64  }
  0x16   : > { %p2258_p10 = pnand %p1832_p9, %p77_p1  ;;  %s2518_s5 = sld [smem:[#allocation24_spill]] }
  0x17   : > { %s337_s13 = sshll.u32 %s2515_s3, 4  ;;  %s2506_s29 = smov 4   ;;  %s338_s13 = int_to_ptr.hbm [resolvable:$true] %s337_s13 }
  0x18   : > { %1835 = dma.hbm_to_vmem [thread:$0]  (!%p2258_p10), %s338_s13, 1024, %s340_s16, [#allocation10], %s2505_s26, %s2505_s26, %s2506_s29  }
  0x19   : > { %s2137_s30 = smov [#allocation12]   ;;  %s2519_s4 = sld [smem:[#allocation23_spill]] }
  0x1a   : > { %s367_s15 = sshll.u32 %s2137_s30, 4  ;;  %s2520_s6 = sld [smem:[#allocation25_spill]]  ;;  %s368_s15 = int_to_ptr.vmem [resolvable:$true] %s367_s15 }
  0x1b   : > { %s2138_s19 = smov [#allocation11]   ;;  %s2139_s28 = smov [#allocation14]  }
  0x1c   : > { %s365_s20 = sshll.u32 %s2518_s5, 4  ;;  %s353_s3 = sshll.u32 %s2138_s19, 4  ;;  %s366_s20 = int_to_ptr.hbm [resolvable:$true] %s365_s20  ;;  %s354_s3 = int_to_ptr.vmem [resolvable:$true] %s353_s3 }
  0x1d   : > { %1841 = dma.hbm_to_vmem [thread:$0]  (!%p2258_p10), %s366_s20, 1536, %s368_s15, [#allocation13], %s2505_s26, %s2505_s26, %s2506_s29  }
  0x1e   : > { %s381_s20 = sshll.u32 %s2139_s28, 4  ;;  %s2293_s30 = sadd.s32 1, %s2132_s24   ;;  %s382_s20 = int_to_ptr.vmem [resolvable:$true] %s381_s20 }
  0x1f   : > { %s351_s21 = sshll.u32 %s2519_s4, 4  ;;  %s63_s15 = sadd.s32 1, %s2128_s23  ;;  %s352_s21 = int_to_ptr.hbm [resolvable:$true] %s351_s21 }
  0x20   : > { %s379_s18 = sshll.u32 %s2520_s6, 4  ;;  %s60_s13 = ssub.s32 %s2132_s24, %s2293_s30  ;;  %s380_s18 = int_to_ptr.hbm [resolvable:$true] %s379_s18 }
  0x21   : > { %1838 = dma.hbm_to_vmem [thread:$0]  (!%p2258_p10), %s352_s21, 1536, %s354_s3, [#allocation10], %s2505_s26, %s2505_s26, %s2506_s29  }
  0x22   : > { %1844 = dma.hbm_to_vmem [thread:$0]  (!%p2258_p10), %s380_s18, 1536, %s382_s20, [#allocation13], %s2505_s26, %s2505_s26, %s2506_s29  }
  0x23   : > { %p70_p12 = scmp.ne.s32.totalorder %s2128_s23, %s2124_s22  ;;  %p61_p13 = scmp.eq.s32.totalorder %s60_s13, 0 }
  0x24   : > { %p71_p0 = scmp.eq.s32.totalorder %s2132_s24, 0  ;;  %p1857_p5 = scmp.lt.s32.totalorder %s2132_s24, 2 }
  0x25   : > { %p2303_p3 = por %p310_p2, %p70_p12  ;;  %s417_s17 = sand.u32 1, %s2128_s23  }
  0x26   : > { %s2309_s16 = scalar_select %p61_p13, %s2128_s23, %s63_s15  }
  0x27   : > { %p72_p7 = por %p71_p0, %p70_p12  ;;  %s1517_s19 = sshll.u32 %s417_s17, 3 }
  0x28   : > { %s1757_s18 = sshll.u32 %s2132_s24, 3  ;;  %s421_s26 = scalar_lea.vmem [#allocation6], %s1517_s19 }
  0x29   : > { %s426_s20 = scalar_lea.hbm %s2491_s1, %s1757_s18  ;;  %s429_s29 = sshll.u32 %s421_s26, 4  ;;  %s430_s29 = int_to_ptr.vmem [resolvable:$true] %s429_s29 }
  0x2a   : > { %s427_s13 = sshll.u32 %s426_s20, 4  ;;  %p2316_p2 = pnand %p1857_p5, %p72_p7  ;;  %s428_s13 = int_to_ptr.hbm [resolvable:$true] %s427_s13 }
  0x2b   : > { %s418_s15 = scalar_lea.sflag [#allocation7], %s417_s17  ;;  %s2028_s5 = sshra.s32 %s428_s13, 4  ;;  %s2029_s5 = int_to_ptr.hbm [resolvable:$true] %s2028_s5 }
  0x2c   : > { %s2030_s6 = scalar_lea.hbm %s2029_s5, 8  ;;  %p2032_p10 = pneg %p2316_p2 }
  0x2d   : > { %p2031_p9 = scmp.ne.s32.totalorder %s2029_s5, %s2030_s6  ;;  %s2035_s26 = scalar_lea.hbm %s2491_s1, 16 }
  0x2e   : > { %p2036_p0 = scmp.lt.s32.totalorder %s2029_s5, %s2491_s1  ;;  %p2037_p5 = scmp.lt.s32.totalorder %s2035_s26, %s2030_s6 }
  0x2f   : > { %p2033_p12 = pnand %p2032_p10, %p2031_p9 }
  0x30   : > { %p2038_p7 = por %p2037_p5, %p2036_p0 }
  0x31   : > { %p2034_p13 = pneg %p2033_p12 }
  0x33   : > { %p2039_p11 = pnand %p2038_p7, %p2034_p13 }
  0x35   : > { %2042 = shalt.err (!%p2039_p11)
}
  0x36   : > { %s2523_s17 = smov 4   ;;  %s2524_s20 = smov 64  }
  0x37   : > { %1848 = dma.hbm_to_vmem [thread:$0]  (!%p2316_p2), %s428_s13, 128, %s430_s29, %s418_s15, %s2524_s20, %s2524_s20, %s2523_s17  }
  0x38   : > { %441 = sbr.rel (%p2250_p8) target bundleno = 718 (0x2ce), region = 68  ;;  %s2336_s18 = sand.u32 (!%p2250_p8), 1, %s2124_s22  }
  0x39   : > { %s1521_s5 = sshll.u32 (!%p2250_p8), %s2336_s18, 3  ;;  %s444_s6 = scalar_lea.sflag (!%p2250_p8), [#allocation7], %s2336_s18 }
  0x3a   : > { %s2340_s19 = scalar_lea.vmem (!%p2250_p8), [#allocation6], %s1521_s5 }
  0x3d   : > { %2103 = dma.done.wait (%p2237_p4), %s444_s6, 128  }
  0x3e   : > { %2105 = vsyncadd (%p2237_p4), %s444_s6, 4294967168 }
  0x3f   : > { %2107 = dma.done.wait (%p77_p1), [#allocation10], 2560  }
  0x40   : > { %2109 = vsyncadd (%p77_p1), [#allocation10], 4294964736 }
  0x41   : > { %2111 = dma.done.wait (%p77_p1), [#allocation13], 3072  }
  0x42   : > { %2113 = vsyncadd (%p77_p1), [#allocation13], 4294964224  ;;  %p513_p8 = scmp.lt.s32.totalorder %s2228_s25, 1  ;;  %vm590_vm0 = vcmask 1043456   ;;  %v1759_v2 = vld [vmem:[%s2492_s2] sm:$0xff]  ;;  %vm586_vm1 = vcmask 64512  }
  0x43   : > { %v1763_v3 = vld [vmem:[#allocation9 + $0x18] sm:$0xff]  ;;  %v1762_v4 = vld [vmem:[#allocation9 + $0x10] sm:$0xff]  ;;  %v1761_v5 = vld [vmem:[#allocation9 + $0x8] sm:$0xff]  ;;  %vm518_vm2 = vcmask 516096   ;;  %vm519_vm3 = vsmask.f32 256 }
  0x44   : > { %s514_s4 = scalar_select %p513_p8, %s2228_s25, 1  ;;  %731 = vmatpush.bf16.msra.mxu2 %v1763_v3  ;;  %vm2364_vm4 = vmand %vm518_vm2, %vm519_vm3  ;;  %v521_v7 = vld [vmem:[#allocation2 + $0x8] sm:$0x1]  ;;  %v1760_v9 = vld [vmem:[#allocation9] sm:$0xff]  ;;  %vm568_vm5 = vcmask 519168   ;;  %vm677_vm6 = vcmask 523264  }
  0x45   : > { %v522_v8 = vsel %vm2364_vm4, 0, %v521_v7  ;;  %v1768_v10 = vld [vmem:[#allocation9 + $0x38] sm:$0xff]  ;;  %v1767_v11 = vld [vmem:[#allocation9 + $0x30] sm:$0xff]  ;;  %v1766_v12 = vld [vmem:[#allocation9 + $0x28] sm:$0xff]  ;;  %vm640_vm7 = vsmask.f32 7424 }
  0x46   : > { %s1527_s14 = sshll.u32 %s514_s4, 2  ;;  %523 = vst [vmem:[#allocation2 + $0x8] sm:$0x1] %v522_v8  ;;  %685 = vmatpush.bf16.msra.mxu1 %v1768_v10  ;;  %v1765_v13 = vld [vmem:[#allocation9 + $0x20] sm:$0xff]  ;;  %v1776_v32 = vld [vmem:[#allocation12 + $0x38] sm:$0xff]  ;;  %v1775_v47 = vld [vmem:[#allocation12 + $0x30] sm:$0xff] }
  0x47   : > { %s516_s13 = scalar_lea.vmem %s2490_s0, %s1527_s14  ;;  %v524_v33 = vld [vmem:[#allocation3] sm:$0x1]  ;;  %vm527_vm8 = vsmask.f32 7938  ;;  %v529_v36 = vld [vmem:[#allocation3 + $0x8] sm:$0x1]  ;;  %830 = vmatpush.bf16.msra.mxu3 %v1776_v32 }
  0x48   : > { %v578_v0 = vld [vmem:[%s516_s13] sm:$0xf]  ;;  %732 = vmatpush.bf16.msra.mxu2 %v1762_v4  ;;  %v525_v34 = vsel %vm2364_vm4, 0, %v524_v33  ;;  %vm2378_vm9 = vmand %vm518_vm2, %vm527_vm8  ;;  %v538_v40 = vld [vmem:[#allocation5] sm:$0x1]  ;;  %vm1022_vm13 = vcmask 1046528  }
  0x49   : > { %v592_v1 = vsel %vm590_vm0, %v578_v0, 0  ;;  %v535_v37 = vld [vmem:[#allocation4 + $0x8] sm:$0x1]  ;;  %526 = vst [vmem:[#allocation3] sm:$0x1] %v525_v34  ;;  %v530_v38 = vsel %vm2378_vm9, 0, %v529_v36  ;;  %vm2393_vm10 = vmand %vm568_vm5, %vm527_vm8 }
  0x4a   : > { %601 = vmatpush.bf16.msra.mxu0 %v592_v1  ;;  %686 = vmatpush.bf16.msra.mxu1 %v1767_v11  ;;  %v536_v39 = vsel %vm2378_vm9, 0, %v535_v37  ;;  %531 = vst [vmem:[#allocation3 + $0x8] sm:$0x1] %v530_v38  ;;  %v539_v41 = vsel %vm2364_vm4, 0, %v538_v40  ;;  %v541_v42 = vld [vmem:[#allocation5 + $0x8] sm:$0x1] }
  0x4b   : > { %537 = vst [vmem:[#allocation4 + $0x8] sm:$0x1] %v536_v39  ;;  %v542_v43 = vsel %vm2378_vm9, 0, %v541_v42  ;;  %v544_v44 = vld [vmem:[%s2340_s19] sm:$0xf]  ;;  %831 = vmatpush.bf16.msra.mxu3 %v1775_v47  ;;  %v1774_v51 = vld [vmem:[#allocation12 + $0x28] sm:$0xff] }
  0x4c   : > { %733 = vmatpush.bf16.msra.mxu2 %v1761_v5  ;;  %540 = vst [vmem:[#allocation5] sm:$0x1] %v539_v41  ;;  %v549_v45 = vshrl.u32 %v544_v44, 16  ;;  %v552_v46 = vshll.u32 %v544_v44, 16  ;;  %v1772_v49 = vld [vmem:[#allocation11 + $0x38] sm:$0xff]  ;;  %v1771_v55 = vld [vmem:[#allocation11 + $0x30] sm:$0xff] }
  0x4d   : > { %1532 = vmatmul.msk.bf16.vlgmr.msra.gmra.mxu0 %vm586_vm1, %v1759_v2  ;;  %v622_v16 = vld [vmem:[#allocation2 + $0x8] sm:$0x1]  ;;  %543 = vst [vmem:[#allocation5 + $0x8] sm:$0x1] %v542_v43  ;;  %v1773_v56 = vld [vmem:[#allocation12 + $0x20] sm:$0xff]  ;;  %v1786_v60 = vld [vmem:[#allocation12 + $0x18] sm:$0xff] }
  0x4e   : > { %687 = vmatpush.bf16.msra.mxu1 %v1766_v12  ;;  %v637_v19 = vunpack.c.l.b16 %v622_v16  ;;  %v551_v48 = vrot.slane %v549_v45, 7  ;;  %876 = vmatpush.bf16.msrb.mxu0 %v1772_v49  ;;  %v545_v57 = vld [vmem:[%s2340_s19 + $0x4] sm:$0xf]  ;;  %v1770_v59 = vld [vmem:[#allocation11 + $0x28] sm:$0xff]  ;;  %vm546_vm11 = vsmask.f32 4368 }
  0x4f   : > { %832 = vmatpush.bf16.msra.mxu3 %v1774_v51  ;;  %v557_v58 = vshrl.u32 %v545_v57, 16  ;;  %v1758_v61 = vld [vmem:[%s2340_s19] sm:$0xff]  ;;  %v560_v63 = vshll.u32 %v545_v57, 16  ;;  %vm2403_vm12 = vmor %vm519_vm3, %vm546_vm11  ;;  %v1769_v5 = vld [vmem:[#allocation11 + $0x20] sm:$0xff]  ;;  %s1526_s14 = sshll.u32 %s2336_s18, 4  ;;  %s1811_s13 = sshll.u32 %s2228_s25, 4 }
  0x50   : > { %734 = vmatpush.bf16.msra.mxu2 %v1760_v9  ;;  %v639_v23 = vpack.c.b16 %v637_v19, %v637_v19  ;;  %v554_v50 = vor.u32 %v552_v46, %v551_v48  ;;  %v555_v0 = vrot.slane %v551_v48, 4  ;;  %v1785_v7 = vld [vmem:[#allocation12 + $0x10] sm:$0xff]  ;;  %v1781_v8 = vld [vmem:[#allocation11 + $0x18] sm:$0xff]  ;;  %v1784_v11 = vld [vmem:[#allocation12 + $0x8] sm:$0xff]  ;;  %s1383_s3 = scalar_lea.hbm %s2502_s12, %s1811_s13  ;;  %s512_s28 = scalar_lea.vmem [#allocation15], %s1526_s14 }
  0x51   : > { %v559_v62 = vrot.slane %v557_v58, 7  ;;  %v1780_v12 = vld [vmem:[#allocation11 + $0x10] sm:$0xff]  ;;  %v1779_v16 = vld [vmem:[#allocation11 + $0x8] sm:$0xff]  ;;  %s1384_s17 = sshll.u32 %s512_s28, 4  ;;  %s1386_s20 = sshll.u32 %s1383_s3, 4  ;;  %s1385_s17 = int_to_ptr.vmem [resolvable:$true] %s1384_s17  ;;  %s1387_s20 = int_to_ptr.hbm [resolvable:$true] %s1386_s20 }
  0x52   : > { %688 = vmatpush.bf16.msra.mxu1 %v1765_v13  ;;  %v649_v25 = vshll.u32 %v639_v23, 16  ;;  %877 = vmatpush.bf16.msrb.mxu0 %v1771_v55  ;;  %v1791_v13 = vld [vmem:[#allocation11 + $0x58] sm:$0xff]  ;;  %v769_v37 = vld [vmem:[#allocation3] sm:$0xf]  ;;  %v773_v49 = vld [vmem:[#allocation3 + $0x8] sm:$0x1] }
  0x53   : > { %v570_v53 = vld [vmem:[#allocation5] sm:$0xf]  ;;  %833 = vmatpush.bf16.msra.mxu3 %v1773_v56  ;;  %v562_v3 = vor.u32 %v560_v63, %v559_v62  ;;  %v564_v4 = vrot.slane %v559_v62, 4  ;;  %s1372_s25 = scalar_lea.sflag [#allocation8], %s2336_s18  ;;  %s2072_s5 = sshra.s32 %s1387_s20, 4  ;;  %s2073_s5 = int_to_ptr.hbm [resolvable:$true] %s2072_s5 }
  0x54   : > { %v651_v29 = vrot.slane %v649_v25, 1  ;;  %v571_v54 = vsel %vm2393_vm10, %v554_v50, %v570_v53  ;;  %990 = vmatpush.bf16.msrb.mxu2 %v1786_v60  ;;  %v575_v1 = vld [vmem:[#allocation5 + $0x8] sm:$0x1]  ;;  %v1788_v25 = vld [vmem:[#allocation11 + $0x40] sm:$0xff]  ;;  %s2074_s6 = scalar_lea.hbm %s2073_s5, 16  ;;  %s2078_s14 = scalar_lea.hbm %s2502_s12, 32 }
  0x55   : > { %572 = vst [vmem:[#allocation5] sm:$0xf] %v571_v54  ;;  %v563_v9 = vsel %vm2403_vm12, %v555_v0, %v562_v3  ;;  %v576_v10 = vsel %vm2364_vm4, %v564_v4, %v575_v1  ;;  %p2075_p1 = scmp.ne.s32.totalorder %s2073_s5, %s2074_s6  ;;  %p2079_p2 = scmp.lt.s32.totalorder %s2073_s5, %s2502_s12 }
  0x56   : > { %878 = vmatpush.bf16.msrb.mxu0 %v1770_v59  ;;  %1591 = vmatmul.msk.bf16.vlgmr.msra.gmra.mxu3 %vm677_vm6, %v1758_v61  ;;  %574 = vst.msk [vmem:[#allocation5 + $0x4] sm:$0xf] %vm568_vm5, %v563_v9  ;;  %p2080_p9 = scmp.lt.s32.totalorder %s2078_s14, %s2074_s6 }
  0x57   : > { %932 = vmatpush.bf16.msrb.mxu1 %v1781_v8  ;;  %577 = vst [vmem:[#allocation5 + $0x8] sm:$0x1] %v576_v10  ;;  %1057 = vmatpush.bf16.msrb.mxu3 %v1791_v13  ;;  %p2076_p4 = pnand %p2075_p1, %p2303_p3 }
  0x58   : > { %991 = vmatpush.bf16.msrb.mxu2 %v1785_v7  ;;  %p2081_p10 = por %p2080_p9, %p2079_p2 }
  0x59   : > { %p2077_p11 = pneg %p2076_p4 }
  0x5a   : > { %879 = vmatpush.bf16.msrb.mxu0 %v1769_v5 }
  0x5b   : > { %933 = vmatpush.bf16.msrb.mxu1 %v1780_v12  ;;  %v532_v12 = vld [vmem:[#allocation4] sm:$0x1]  ;;  %p2082_p12 = pnand %p2081_p10, %p2077_p11 }
  0x5c   : > { %992 = vmatpush.bf16.msrb.mxu2 %v1784_v11  ;;  %v1674_v57 = vld [vmem:[#allocation5] sm:$0xe]  ;;  %v533_v13 = vsel %vm2364_vm4, 0, %v532_v12 }
  0x5d   : > { %v1782_v19 = vld [vmem:[#allocation5] sm:$0xff]  ;;  %534 = vst [vmem:[#allocation4] sm:$0x1] %v533_v13 }
  0x5e   : > { %v1071_v48 = vld [vmem:[#allocation5 + $0x8] sm:$0x1]  ;;  %v1792_v58 = vld [vmem:[#allocation5] sm:$0xf0] }
  0x5f   : > { %934 = vmatpush.bf16.msrb.mxu1 %v1779_v16  ;;  %v1086_v54 = vunpack.c.l.b16 %v1071_v48  ;;  %v1675_v59 = vor.u32 %v1792_v58, %v1674_v57 }
  0x61   : > { %v1088_v60 = vpack.c.b16 %v1086_v54, %v1086_v54  ;;  %v1089_v61 = vrot.slane %v1675_v59, 1 }
  0x63   : > { %v1090_v62 = vrot.slane %v1088_v60, 1 }
  0x64   : > { %v1165_v57 = vld [vmem:[#allocation4] sm:$0xf] }
  0x65   : > { %v1091_v7 = vsel %vm1022_vm13, %v1089_v61, %v1090_v62 }
  0xca   : > { %v603_v14 = vpop.f32.mrf.mxu0 }
  0xcb   : > { %v608_v15 = vpack.c.bf16 %v603_v14, %v603_v14  ;;  %v1796_v14 = vld [vmem:[#allocation12 + $0x58] sm:$0xff] }
  0xcc   : > { %1123 = vmatpush.bf16.msra.mxu0 %v1796_v14  ;;  %v1800_v14 = vld [vmem:[#allocation14 + $0x38] sm:$0xff] }
  0xcd   : > { %610 = vst.msk [vmem:[#allocation2] sm:$0xf] %vm568_vm5, %v608_v15  ;;  %v697_v20 = vunpack.c.l.b16 %v608_v15  ;;  %v1783_v15 = vld [vmem:[#allocation12] sm:$0xff] }
  0xce   : > { %993 = vmatpush.bf16.msrb.mxu2 %v1783_v15  ;;  %v1799_v15 = vld [vmem:[#allocation14 + $0x30] sm:$0xff] }
  0xd2   : > { %v605_v17 = vpop.f32.mrf.mxu0 }
  0xd3   : > { %v609_v18 = vpack.c.bf16 %v605_v17, %v605_v17  ;;  %v1790_v17 = vld [vmem:[#allocation11 + $0x50] sm:$0xff] }
  0xd4   : > { %1058 = vmatpush.bf16.msrb.mxu3 %v1790_v17 }
  0xd5   : > { %611 = vst.msk [vmem:[#allocation2 + $0x4] sm:$0xf] %vm568_vm5, %v609_v18  ;;  %v698_v21 = vunpack.c.l.b16 %v609_v18  ;;  %v1795_v18 = vld [vmem:[#allocation12 + $0x50] sm:$0xff] }
  0xd6   : > { %1124 = vmatpush.bf16.msra.mxu0 %v1795_v18  ;;  %v1798_v18 = vld [vmem:[#allocation14 + $0x28] sm:$0xff] }
  0xd7   : > { %v699_v22 = vpack.c.b16 %v698_v21, %v697_v20  ;;  %v1778_v20 = vld [vmem:[#allocation11] sm:$0xff]  ;;  %v1789_v21 = vld [vmem:[#allocation11 + $0x48] sm:$0xff] }
  0xd8   : > { %935 = vmatpush.bf16.msrb.mxu1 %v1778_v20  ;;  %1059 = vmatpush.bf16.msrb.mxu3 %v1789_v21  ;;  %v1805_v20 = vld [vmem:[#allocation14 + $0x18] sm:$0xff] }
  0xd9   : > { %1570 = vmatmul.msk.bf16.vlgmr.msra.gmra.mxu2 %vm677_vm6, %v699_v22  ;;  %v1794_v22 = vld [vmem:[#allocation12 + $0x48] sm:$0xff]  ;;  %v835_v17 = vpop.f32.mrf.mxu3 }
  0xda   : > { %1125 = vmatpush.bf16.msra.mxu0 %v1794_v22  ;;  %1273 = vmatpush.bf16.msra.mxu2 %v1800_v14 }
  0xdc   : > { %v1764_v24 = vld [vmem:[#allocation2] sm:$0xff]  ;;  %1060 = vmatpush.bf16.msrb.mxu3 %v1788_v25 }
  0xdd   : > { %v644_v26 = vshll.u32 %v1764_v24, 16  ;;  %v642_v27 = vshrl.u32 %v1764_v24, 16  ;;  %v1903_v24 = vld [vmem:[%s2497_s7] ss:$0 sm:$0xff] }
  0xde   : > { %1274 = vmatpush.bf16.msra.mxu2 %v1799_v15 }
  0xdf   : > { %v646_v28 = vrot.slane %v644_v26, 1  ;;  %v1793_v26 = vld [vmem:[#allocation12 + $0x40] sm:$0xff] }
  0xe0   : > { %1126 = vmatpush.bf16.msra.mxu0 %v1793_v26  ;;  %v1810_v26 = vld [vmem:[#allocation14 + $0x58] sm:$0xff] }
  0xe1   : > { %v647_v30 = vor.u32 %v646_v28, %v642_v27  ;;  %1337 = vmatpush.bf16.msra.mxu3 %v1810_v26  ;;  %v1906_v26 = vld [vmem:[%s2500_s10] ss:$0 sm:$0xff] }
  0xe2   : > { %1275 = vmatpush.bf16.msra.mxu2 %v1798_v18 }
  0xe3   : > { %v652_v31 = vsel %vm640_vm7, %v647_v30, %v651_v29 }
  0xe4   : > { %1553 = vmatmul.msk.bf16.vlgmr.msra.gmra.mxu1 %vm677_vm6, %v652_v31 }
  0xe5   : > { %1227 = vmatpush.bf16.msra.mxu1 %v1805_v20 }
  0xe9   : > { %1650 = vmatmul.msk.bf16.vlgmr.msrb.gmra.mxu2 %vm677_vm6, %v1782_v19  ;;  %v1797_v19 = vld [vmem:[#allocation14 + $0x20] sm:$0xff] }
  0xea   : > { %1276 = vmatpush.bf16.msra.mxu2 %v1797_v19 }
 0x15c   : > { %v736_v23 = vpop.f32.mrf.mxu2 }
 0x161   : > { %v690_v27 = vpop.f32.mrf.mxu1 }
 0x162   : > { %v737_v28 = vadd.f32 %v736_v23, %v690_v27  ;;  %v1804_v23 = vld [vmem:[#allocation14 + $0x10] sm:$0xff] }
 0x163   : > { %1228 = vmatpush.bf16.msra.mxu1 %v1804_v23 }
 0x164   : > { %v745_v29 = vadd.f32 %v1903_v24, %v737_v28  ;;  %v738_v32 = vpop.f32.mrf.mxu2 }
 0x166   : > { %v747_v30 = vpack.c.bf16 %v745_v29, %v745_v29  ;;  %v1803_v29 = vld [vmem:[#allocation14 + $0x8] sm:$0xff] }
 0x167   : > { %1229 = vmatpush.bf16.msra.mxu1 %v1803_v29  ;;  %v1907_v29 = vld [vmem:[%s2501_s11] ss:$0 sm:$0xff] }
 0x168   : > { %v750_v31 = vshrl.u32 %v747_v30, 16  ;;  %v753_v35 = vshll.u32 %v747_v30, 16  ;;  %v842_v42 = vunpack.c.l.b16 %v747_v30  ;;  %v1809_v30 = vld [vmem:[#allocation14 + $0x50] sm:$0xff] }
 0x169   : > { %v692_v33 = vpop.f32.mrf.mxu1  ;;  %1338 = vmatpush.bf16.msra.mxu3 %v1809_v30 }
 0x16a   : > { %v752_v34 = vrot.slane %v750_v31, 7  ;;  %v739_v36 = vadd.f32 %v738_v32, %v692_v33  ;;  %v1802_v31 = vld [vmem:[#allocation14] sm:$0xff] }
 0x16b   : > { %1230 = vmatpush.bf16.msra.mxu1 %v1802_v31 }
 0x16c   : > { %v755_v38 = vor.u32 %v753_v35, %v752_v34  ;;  %v746_v39 = vadd.f32 %v1903_v24, %v739_v36  ;;  %v756_v50 = vrot.slane %v752_v34, 4  ;;  %v837_v24 = vpop.f32.mrf.mxu3  ;;  %v995_v27 = vpop.f32.mrf.mxu2  ;;  %v1808_v34 = vld [vmem:[#allocation14 + $0x48] sm:$0xff] }
 0x16d   : > { %1339 = vmatpush.bf16.msra.mxu3 %v1808_v34 }
 0x16e   : > { %v770_v40 = vsel %vm2393_vm10, %v755_v38, %v769_v37  ;;  %v748_v41 = vpack.c.bf16 %v746_v39, %v746_v39  ;;  %v1904_v39 = vld [vmem:[%s2498_s8] ss:$0 sm:$0xff] }
 0x16f   : > { %771 = vst [vmem:[#allocation3] sm:$0xf] %v770_v40 }
 0x170   : > { %v758_v43 = vshrl.u32 %v748_v41, 16  ;;  %v843_v44 = vunpack.c.l.b16 %v748_v41  ;;  %v761_v46 = vshll.u32 %v748_v41, 16 }
 0x172   : > { %v760_v45 = vrot.slane %v758_v43, 7  ;;  %v844_v47 = vpack.c.b16 %v843_v44, %v842_v42  ;;  %v1807_v42 = vld [vmem:[#allocation14 + $0x40] sm:$0xff] }
 0x173   : > { %1340 = vmatpush.bf16.msra.mxu3 %v1807_v42 }
 0x174   : > { %v763_v51 = vor.u32 %v761_v46, %v760_v45  ;;  %v765_v53 = vrot.slane %v760_v45, 4  ;;  %1608 = vmatmul.msk.bf16.vlgmr.msrb.gmra.mxu0 %vm677_vm6, %v844_v47  ;;  %v997_v43 = vpop.f32.mrf.mxu2 }
 0x176   : > { %v764_v55 = vsel %vm2403_vm12, %v756_v50, %v763_v51  ;;  %v774_v56 = vsel %vm2364_vm4, %v765_v53, %v773_v49  ;;  %v1653_v1 = vld [vmem:[#allocation3] sm:$0xe] }
 0x177   : > { %772 = vst.msk [vmem:[#allocation3 + $0x4] sm:$0xf] %vm568_vm5, %v764_v55 }
 0x178   : > { %775 = vst [vmem:[#allocation3 + $0x8] sm:$0x1] %v774_v56 }
 0x17e   : > { %v1777_v63 = vld [vmem:[#allocation3] sm:$0xff] }
 0x17f   : > { %v1787_v0 = vld [vmem:[#allocation3] sm:$0xf0]  ;;  %v1004_v3 = vld [vmem:[#allocation3 + $0x8] sm:$0x1]  ;;  %1629 = vmatmul.msk.bf16.vlgmr.msrb.gmra.mxu1 %vm677_vm6, %v1777_v63 }
 0x180   : > { %v1019_v4 = vunpack.c.l.b16 %v1004_v3  ;;  %v1654_v5 = vor.u32 %v1787_v0, %v1653_v1 }
 0x182   : > { %v1021_v8 = vpack.c.b16 %v1019_v4, %v1019_v4  ;;  %v1023_v9 = vrot.slane %v1654_v5, 1  ;;  %v1169_v5 = vld [vmem:[#allocation4 + $0x8] sm:$0x1] }
 0x184   : > { %v1024_v10 = vrot.slane %v1021_v8, 1  ;;  %1692 = vmatmul.msk.bf16.vlgmr.msra.gmra.mxu0 %vm677_vm6, %v1091_v7 }
 0x186   : > { %v1025_v11 = vsel %vm1022_vm13, %v1023_v9, %v1024_v10 }
 0x187   : > { %1671 = vmatmul.msk.bf16.vlgmr.msrb.gmra.mxu3 %vm677_vm6, %v1025_v11 }
 0x1f1   : > { %v881_v16 = vpop.f32.mrf.mxu0 }
 0x1f2   : > { %v882_v25 = vadd.f32 %v881_v16, %v835_v17 }
 0x1f9   : > { %v883_v22 = vpop.f32.mrf.mxu0 }
 0x1fa   : > { %v884_v37 = vadd.f32 %v883_v22, %v837_v24  ;;  %v1905_v22 = vld [vmem:[%s2499_s9] ss:$0 sm:$0xff] }
 0x1fc   : > { %v937_v21 = vpop.f32.mrf.mxu1 }
 0x1fd   : > { %v942_v28 = vadd.f32 %v937_v21, %v882_v25 }
 0x1ff   : > { %v1000_v32 = vadd.f32 %v995_v27, %v942_v28 }
 0x201   : > { %v1128_v33 = vpop.f32.mrf.mxu0 }
 0x204   : > { %v939_v35 = vpop.f32.mrf.mxu1 }
 0x205   : > { %v943_v40 = vadd.f32 %v939_v35, %v884_v37 }
 0x207   : > { %v1001_v45 = vadd.f32 %v997_v43, %v943_v40 }
 0x209   : > { %v1130_v50 = vpop.f32.mrf.mxu0 }
 0x20a   : > { %v1062_v36 = vpop.f32.mrf.mxu3 }
 0x20b   : > { %v1067_v38 = vadd.f32 %v1062_v36, %v1000_v32 }
 0x20d   : > { %v1133_v41 = vadd.f32 %v1128_v33, %v1067_v38 }
 0x20f   : > { %v1139_v44 = vadd.f32 %v1904_v39, %v1133_v41 }
 0x211   : > { %v1141_v46 = vmax.f32 %v1139_v44, 0.0 }
 0x212   : > { %v1064_v47 = vpop.f32.mrf.mxu3 }
 0x213   : > { %v1143_v48 = vpack.c.bf16 %v1141_v46, %v1141_v46  ;;  %v1068_v49 = vadd.f32 %v1064_v47, %v1001_v45 }
 0x215   : > { %v1146_v51 = vshrl.u32 %v1143_v48, 16  ;;  %v1134_v53 = vadd.f32 %v1130_v50, %v1068_v49  ;;  %v1149_v55 = vshll.u32 %v1143_v48, 16  ;;  %v1239_v62 = vunpack.c.l.b16 %v1143_v48 }
 0x217   : > { %v1148_v54 = vrot.slane %v1146_v51, 7  ;;  %v1140_v56 = vadd.f32 %v1904_v39, %v1134_v53 }
 0x219   : > { %v1151_v58 = vor.u32 %v1149_v55, %v1148_v54  ;;  %v1142_v59 = vmax.f32 %v1140_v56, 0.0  ;;  %v1152_v7 = vrot.slane %v1148_v54, 4 }
 0x21b   : > { %v1166_v60 = vsel %vm2393_vm10, %v1151_v58, %v1165_v57  ;;  %v1144_v61 = vpack.c.bf16 %v1142_v59, %v1142_v59 }
 0x21c   : > { %1167 = vst [vmem:[#allocation4] sm:$0xf] %v1166_v60 }
 0x21d   : > { %v1154_v63 = vshrl.u32 %v1144_v61, 16  ;;  %v1240_v0 = vunpack.c.l.b16 %v1144_v61  ;;  %v1157_v3 = vshll.u32 %v1144_v61, 16 }
 0x21f   : > { %v1156_v1 = vrot.slane %v1154_v63, 7  ;;  %v1241_v4 = vpack.c.b16 %v1240_v0, %v1239_v62 }
 0x221   : > { %v1159_v8 = vor.u32 %v1157_v3, %v1156_v1  ;;  %v1161_v9 = vrot.slane %v1156_v1, 4  ;;  %1730 = vmatmul.msk.bf16.vlgmr.msra.gmra.mxu2 %vm677_vm6, %v1241_v4 }
 0x223   : > { %v1160_v10 = vsel %vm2403_vm12, %v1152_v7, %v1159_v8  ;;  %v1170_v52 = vsel %vm2364_vm4, %v1161_v9, %v1169_v5  ;;  %v1733_v13 = vld [vmem:[#allocation4] sm:$0xe] }
 0x224   : > { %1168 = vst.msk [vmem:[#allocation4 + $0x4] sm:$0xf] %vm568_vm5, %v1160_v10 }
 0x225   : > { %1171 = vst [vmem:[#allocation4 + $0x8] sm:$0x1] %v1170_v52 }
 0x22b   : > { %v1801_v11 = vld [vmem:[#allocation4] sm:$0xff] }
 0x22c   : > { %v1806_v12 = vld [vmem:[#allocation4] sm:$0xf0]  ;;  %v1285_v14 = vld [vmem:[#allocation4 + $0x8] sm:$0x1]  ;;  %1713 = vmatmul.msk.bf16.vlgmr.msra.gmra.mxu1 %vm677_vm6, %v1801_v11 }
 0x22d   : > { %v1300_v15 = vunpack.c.l.b16 %v1285_v14  ;;  %v1734_v16 = vor.u32 %v1806_v12, %v1733_v13 }
 0x22f   : > { %v1302_v17 = vpack.c.b16 %v1300_v15, %v1300_v15  ;;  %v1303_v18 = vrot.slane %v1734_v16, 1 }
 0x231   : > { %v1304_v19 = vrot.slane %v1302_v17, 1 }
 0x233   : > { %v1305_v2 = vsel %vm1022_vm13, %v1303_v18, %v1304_v19 }
 0x234   : > { %1751 = vmatmul.msk.bf16.vlgmr.msra.gmra.mxu3 %vm677_vm6, %v1305_v2 }
 0x2a4   : > { %v1278_v20 = vpop.f32.mrf.mxu2 }
 0x2a9   : > { %v1232_v6 = vpop.f32.mrf.mxu1 }
 0x2aa   : > { %v1279_v21 = vadd.f32 %v1278_v20, %v1232_v6 }
 0x2ac   : > { %v1280_v30 = vpop.f32.mrf.mxu2 }
 0x2b1   : > { %v1234_v27 = vpop.f32.mrf.mxu1 }
 0x2b2   : > { %v1281_v31 = vadd.f32 %v1280_v30, %v1234_v27 }
 0x2b7   : > { %v1342_v23 = vpop.f32.mrf.mxu3 }
 0x2b8   : > { %v1347_v24 = vadd.f32 %v1342_v23, %v1279_v21 }
 0x2ba   : > { %v1353_v25 = vadd.f32 %v1905_v22, %v1347_v24 }
 0x2bc   : > { %v1355_v28 = vmax.f32 %v1353_v25, 0.0 }
 0x2be   : > { %v1361_v32 = vmul.f32 %v1906_v26, %v1355_v28 }
 0x2bf   : > { %v1344_v33 = vpop.f32.mrf.mxu3 }
 0x2c0   : > { %v1367_v34 = vadd.f32 %v1907_v29, %v1361_v32  ;;  %v1348_v35 = vadd.f32 %v1344_v33, %v1281_v31 }
 0x2c2   : > { %1369 = vst.msk [vmem:[%s512_s28] sm:$0xff] %vm677_vm6, %v1367_v34  ;;  %v1354_v36 = vadd.f32 %v1905_v22, %v1348_v35 }
 0x2c4   : > { %v1356_v37 = vmax.f32 %v1354_v36, 0.0 }
 0x2c6   : > { %v1362_v38 = vmul.f32 %v1906_v26, %v1356_v37 }
 0x2c8   : > { %v1368_v39 = vadd.f32 %v1907_v29, %v1362_v38 }
 0x2ca   : > { %1370 = vst.msk [vmem:[%s512_s28 + $0x8] sm:$0xff] %vm677_vm6, %v1368_v39 }
 0x2cb   : > { %2085 = shalt.err (!%p2082_p12)
}
 0x2cc   : > { %s2140_s18 = smov 128   ;;  %s2141_s13 = smov 8  }
 0x2cd   : > { %1830 = dma.vmem_to_hbm [thread:$0]  (%p2303_p3), %s1385_s17, 256, %s1387_s20, %s1372_s25, %s2140_s18, %s2140_s18, %s2141_s13  }
 0x2ce PF: > { %s2533_s15 = sld [smem:[#allocation20_spill]]  ;;  %p2535_p13 = scmp.ge.s32.totalorder %s2132_s24, 2 }
 0x2d0   : > { %p1850_p0 = pnand %p2535_p13, %p2242_p6 }
 0x2d2   : > { %p1851_p5 = pneg %p1850_p0 }
 0x2d4   : > { %s1401_s3 = sand.u32 1, %s2533_s15  }
 0x2d5   : > { %s1402_s28 = scalar_lea.sflag [#allocation8], %s1401_s3 }
 0x2d6   : > { %2115 = dma.done.wait (%p1851_p5), %s1402_s28, 256  }
 0x2d7   : > { %2117 = vsyncadd (%p1851_p5), %s1402_s28, 4294967040  ;;  %p27_p7 = scmp.ge.s32.totalorder %s2293_s30, 4   ;;  %s2536_s21 = smov %s2124_s22 }
 0x2d8   : > { %s2537_s22 = smov %s2128_s23  ;;  %s2538_s23 = smov %s2309_s16 }
 0x2d9   : > { %s2539_s24 = smov %s2293_s30  ;;  %29 = sbr.rel (!%p27_p7) target bundleno = 12 (0xc), region = 139 }
 0x2de   :  { %1408 = vsyncpa [#allocation7], 1 }
 0x2df   :  { %1410 = vsyncpa [#allocation7 + $0x1], 1 }
 0x2e0   :  { %1411 = vsyncpa [#allocation10], 1 }
 0x2e1   :  { %1412 = vsyncpa [#allocation13], 1 }
 0x2e2   :  { %1413 = vsyncpa [#allocation8], 1 }
 0x2e3   :  { %1415 = vsyncpa [#allocation8 + $0x1], 1 }

</bundles_post_ra>
